<compile_context>
chip_gen: v6e
topology: v6e:2x2x1
jax: 0.10.0
libtpu: 0.0.40
codegen_flags: <defaults>
</compile_context>

<pallas_src>
import functools

import jax
import jax.numpy as jnp
from jax import lax
from jax.experimental import pallas as pl
from jax.experimental.pallas import tpu as pltpu

EPS = 1e-5  # PyTorch InstanceNorm2d default
_VMEM_LIMIT = 64 * 1024 * 1024   # explicit raise over 16/32 MiB defaults, <= v7x physical
_TILE_BUDGET = 28 * 1024 * 1024  # target per-tile working set (leaves pipelining headroom)


def _round_up(x, m):
    return (x + m - 1) // m * m


# ---------------------------------------------------------------------------
# Pass 1: conv (one deep-K matmul per tile) + masked per-channel sum / sumsq
# ---------------------------------------------------------------------------
def _conv_stats_kernel(x_ref, w_ref, mask_ref, conv_ref, sum_ref, sq_ref, stk_ref,
                       *, k, s, c_in, W_row, TCW):
    # x_ref:    (s*s*C_in, L_tile)  phase-major flattened padded planes, this row tile
    # w_ref:    (C_out, K)          K order = (kh, kw, c_in)
    # mask_ref: (1, TCW)            1.0 where the wide column is a real output position
    # conv_ref: (C_out, TCW)        fp32 conv output tile (wide layout)
    # sum_ref, sq_ref: (C_out, 1)   per-tile masked stats
    # stk_ref:  (K, TCW)            in-VMEM im2col scratch (MXU dtype)

    # ---- build stacked im2col operand: one contiguous slab copy per tap ----
    for kh in range(k):
        dh, pr = kh // s, kh % s
        for kw in range(k):
            dw, pc = kw // s, kw % s
            ph = pr * s + pc                       # phase plane for this tap
            start = dh * W_row + dw                # lane-aligned row part + tiny kw shift
            r0 = (kh * k + kw) * c_in
            stk_ref[r0:r0 + c_in, :] = x_ref[ph * c_in:(ph + 1) * c_in,
                                             start:start + TCW]

    # ---- single deep-K MXU matmul (K = k*k*C_in) ----
    y = jnp.dot(w_ref[...], stk_ref[...], preferred_element_type=jnp.float32)
    conv_ref[...] = y

    # ---- masked per-channel sum / sum-of-squares (lane reductions on the XLU) ----
    m = mask_ref[...]                              # (1, TCW)
    ym = y * m
    sum_ref[...] = jnp.sum(ym, axis=1, keepdims=True)
    sq_ref[...] = jnp.sum(ym * y, axis=1, keepdims=True)


# ---------------------------------------------------------------------------
# Pass 2: per-channel scale/shift from the reduced stats, single FMA apply
# ---------------------------------------------------------------------------
def _norm_apply_kernel(conv_ref, sum_ref, sq_ref, gamma_ref, beta_ref, out_ref,
                       *, inv_cnt):
    # TODO(synk): two-pass (centered) variance behind a flag if cancellation ever matters.
    mean = sum_ref[...] * inv_cnt                          # (C_out, 1)
    var = sq_ref[...] * inv_cnt - mean * mean              # biased (torch default)
    scale = gamma_ref[...] * lax.rsqrt(var + EPS)          # (C_out, 1), EUP rsqrt
    shift = beta_ref[...] - mean * scale
    out_ref[...] = (conv_ref[...] * scale + shift).astype(out_ref.dtype)


def convolutional_layer(x, weight, bias, gamma, beta, *, kernel_size, stride,
                        mxu_dtype=None):
    """x: (N, C_in, H, W) NCHW.  weight: (C_out, C_in, k, k) (PyTorch OIHW).

    bias is accepted for API parity but unused: InstanceNorm's mean subtraction
    cancels a per-channel constant bias exactly.
    """
    # TODO(synk): norm='none'/'batch' paths not implemented (bias must be re-added for norm='none').
    del bias
    N, C_in, H, W = x.shape
    C_out = weight.shape[0]
    k, s = int(kernel_size), int(stride)
    pad = k // 2

    mxu_dt = jnp.dtype(mxu_dtype) if mxu_dtype is not None else jnp.dtype(x.dtype)
    mxu_bytes = mxu_dt.itemsize

    # ---- ReflectionPad2d (glue, plain JAX) ----
    x_pad = jnp.pad(x, ((0, 0), (0, 0), (pad, pad), (pad, pad)), mode="reflect")
    Hp, Wp = H + 2 * pad, W + 2 * pad
    H_out = (Hp - k) // s + 1
    W_out = (Wp - k) // s + 1

    dh_max = (k - 1) // s
    dw_max = (k - 1) // s
    W_row = _round_up(W_out + dw_max, 128)        # lane-aligned flat row stride
    K = k * k * C_in
    SC = s * s * C_in

    # ---- pick output-row tile size TR from a VMEM budget ----
    # per output row: im2col scratch + double-buffered fp32 conv out + double-buffered x tile
    row_bytes = W_row * (K * mxu_bytes + 8 * C_out + 2 * SC * mxu_bytes + 8)
    TR = max(8, (_TILE_BUDGET // max(row_bytes, 1)) // 8 * 8)
    TR = min(TR, 256, _round_up(H_out, 8))
    H_out_pad = _round_up(H_out, TR)
    T = H_out_pad // TR
    R_in = TR + dh_max
    TCW = TR * W_row                              # wide output columns per tile (mult of 128)
    L_tile = R_in * W_row + 128                   # tail guard for the kw shift
    # TODO(synk): also tile columns for extremely wide images (W_row*K alone > budget).

    # ---- space-to-depth by the stride: s*s phase planes (pure permutation) ----
    H_plane = T * TR + dh_max
    planes = []
    for pr in range(s):
        for pc in range(s):
            p_img = x_pad[:, :, pr::s, pc::s]
            ph_h, ph_w = p_img.shape[2], p_img.shape[3]
            p_img = jnp.pad(p_img, ((0, 0), (0, 0),
                                    (0, max(0, H_plane - ph_h)),
                                    (0, max(0, W_row - ph_w))))
            planes.append(p_img[:, :, :H_plane, :W_row])
    planes = jnp.stack(planes, axis=1).reshape(N, SC, H_plane, W_row).astype(mxu_dt)

    # ---- overlapping row tiles (tiny halo duplication: dh_max rows per tile) ----
    tiles = [planes[:, :, t * TR:t * TR + R_in, :].reshape(N, SC, R_in * W_row)
             for t in range(T)]
    x_tiles = jnp.stack(tiles, axis=1)                               # (N, T, SC, R_in*W_row)
    x_tiles = jnp.pad(x_tiles, ((0, 0), (0, 0), (0, 0), (0, L_tile - R_in * W_row)))

    # ---- weights / affine params / validity mask ----
    w_mat = jnp.transpose(weight, (0, 2, 3, 1)).reshape(C_out, K).astype(mxu_dt)
    gamma_col = gamma.reshape(C_out, 1).astype(jnp.float32)
    beta_col = beta.reshape(C_out, 1).astype(jnp.float32)

    col = jnp.arange(TCW, dtype=jnp.int32)
    col_in_row = col % W_row
    row_in_tile = col // W_row
    tile_row0 = (jnp.arange(T, dtype=jnp.int32) * TR)[:, None]
    valid = (col_in_row[None, :] < W_out) & ((row_in_tile[None, :] + tile_row0) < H_out)
    mask = valid.astype(jnp.float32).reshape(T, 1, TCW)

    inv_cnt = 1.0 / float(H_out * W_out)

    # ------------------------------------------------------------------
    # Pass 1: conv + per-tile stats   (grid = (N, T), both axes parallel)
    # ------------------------------------------------------------------
    kern1 = functools.partial(_conv_stats_kernel, k=k, s=s, c_in=C_in,
                              W_row=W_row, TCW=TCW)
    flops1 = 2 * N * C_out * K * H_out_pad * W_row
    bytes1 = int(x_tiles.size * x_tiles.dtype.itemsize
                 + w_mat.size * w_mat.dtype.itemsize
                 + mask.size * 4
                 + N * C_out * H_out_pad * W_row * 4
                 + 2 * N * T * C_out * 4)

    conv_wide, sum_tiles, sq_tiles = pl.pallas_call(
        kern1,
        out_shape=(jax.ShapeDtypeStruct((N, C_out, T * TCW), jnp.float32),
                   jax.ShapeDtypeStruct((N, T, C_out, 1), jnp.float32),
                   jax.ShapeDtypeStruct((N, T, C_out, 1), jnp.float32)),
        grid_spec=pltpu.PrefetchScalarGridSpec(
            num_scalar_prefetch=0,
            grid=(N, T),
            in_specs=[
                pl.BlockSpec((None, None, SC, L_tile), lambda n, t: (n, t, 0, 0)),
                pl.BlockSpec((C_out, K), lambda n, t: (0, 0)),
                pl.BlockSpec((None, 1, TCW), lambda n, t: (t, 0, 0)),
            ],
            out_specs=[
                pl.BlockSpec((None, C_out, TCW), lambda n, t: (n, 0, t)),
                pl.BlockSpec((None, None, C_out, 1), lambda n, t: (n, t, 0, 0)),
                pl.BlockSpec((None, None, C_out, 1), lambda n, t: (n, t, 0, 0)),
            ],
            scratch_shapes=[pltpu.VMEM((K, TCW), mxu_dt)],
        ),
        compiler_params=pltpu.CompilerParams(
            dimension_semantics=("parallel", "parallel"),
            vmem_limit_bytes=_VMEM_LIMIT),
        cost_estimate=pl.CostEstimate(flops=flops1, transcendentals=0,
                                      bytes_accessed=bytes1),
    )(x_tiles, w_mat, mask)

    # tiny cross-tile reduction of the stats (plain XLA)
    ssum = jnp.sum(sum_tiles, axis=1)       # (N, C_out, 1)
    ssq = jnp.sum(sq_tiles, axis=1)         # (N, C_out, 1)

    # ------------------------------------------------------------------
    # Pass 2: normalize + affine   (grid = (N, T), both axes parallel)
    # ------------------------------------------------------------------
    kern2 = functools.partial(_norm_apply_kernel, inv_cnt=inv_cnt)
    flops2 = 2 * N * C_out * H_out_pad * W_row
    bytes2 = int(N * C_out * H_out_pad * W_row * (4 + jnp.dtype(x.dtype).itemsize))

    out_wide = pl.pallas_call(
        kern2,
        out_shape=jax.ShapeDtypeStruct((N, C_out, T * TCW), x.dtype),
        grid_spec=pltpu.PrefetchScalarGridSpec(
            num_scalar_prefetch=0,
            grid=(N, T),
            in_specs=[
                pl.BlockSpec((None, C_out, TCW), lambda n, t: (n, 0, t)),
                pl.BlockSpec((None, C_out, 1), lambda n, t: (n, 0, 0)),
                pl.BlockSpec((None, C_out, 1), lambda n, t: (n, 0, 0)),
                pl.BlockSpec((C_out, 1), lambda n, t: (0, 0)),
                pl.BlockSpec((C_out, 1), lambda n, t: (0, 0)),
            ],
            out_specs=pl.BlockSpec((None, C_out, TCW), lambda n, t: (n, 0, t)),
        ),
        compiler_params=pltpu.CompilerParams(
            dimension_semantics=("parallel", "parallel"),
            vmem_limit_bytes=_VMEM_LIMIT),
        cost_estimate=pl.CostEstimate(flops=flops2, transcendentals=N * T * C_out,
                                      bytes_accessed=bytes2),
    )(conv_wide, ssum, ssq, gamma_col, beta_col)

    # (N, C_out, H_out_pad*W_row) -> NCHW, dropping padded rows/columns
    out = out_wide.reshape(N, C_out, H_out_pad, W_row)[:, :, :H_out, :W_out]
    return out


def _reference(x, weight, bias, gamma, beta, *, kernel_size, stride):
    """Pure-JAX reference (reflection pad -> conv (with bias) -> instance norm)."""
    pad = kernel_size // 2
    x_pad = jnp.pad(x, ((0, 0), (0, 0), (pad, pad), (pad, pad)), mode="reflect")
    y = lax.conv_general_dilated(
        x_pad, weight, window_strides=(stride, stride), padding="VALID",
        dimension_numbers=("NCHW", "OIHW", "NCHW"),
    ) + bias.reshape(1, -1, 1, 1)
    mean = jnp.mean(y, axis=(2, 3), keepdims=True)
    var = jnp.mean((y - mean) ** 2, axis=(2, 3), keepdims=True)
    y_hat = (y - mean) * lax.rsqrt(var + EPS)
    return y_hat * gamma.reshape(1, -1, 1, 1) + beta.reshape(1, -1, 1, 1)


if __name__ == "__main__":
    # ConvolutionalLayer(in_channels=4, out_channels=8, kernel_size=3, stride, norm='instance')
    N, C_in, H, W = 2, 4, 16, 16
    C_out, kernel_size = 8, 3

    key = jax.random.PRNGKey(0)
    kx, kw, kb, kg, kbe = jax.random.split(key, 5)
    x = jax.random.normal(kx, (N, C_in, H, W), dtype=jnp.float32)
    weight = 0.1 * jax.random.normal(kw, (C_out, C_in, kernel_size, kernel_size),
                                     dtype=jnp.float32)
    bias = 0.1 * jax.random.normal(kb, (C_out,), dtype=jnp.float32)
    gamma = 1.0 + 0.1 * jax.random.normal(kg, (C_out,), dtype=jnp.float32)
    beta = 0.1 * jax.random.normal(kbe, (C_out,), dtype=jnp.float32)

    for stride in (1, 2):
        out = convolutional_layer(x, weight, bias, gamma, beta,
                                  kernel_size=kernel_size, stride=stride)
        out = jax.block_until_ready(out)
        ref = _reference(x, weight, bias, gamma, beta,
                         kernel_size=kernel_size, stride=stride)
        assert out.shape == ref.shape, (stride, out.shape, ref.shape)
        err = float(jnp.max(jnp.abs(out - ref)))
        assert jnp.allclose(out, ref, rtol=1e-4, atol=1e-4), (stride, err)

    print("KERNEL_OK")
</pallas_src>

<mosaic_0001>
module attributes {stable_mosaic.version = 11 : i64} {
  func.func @_conv_stats_kernel(%arg0: i32, %arg1: i32, %arg2: memref<1x1x4x2432xf32, #tpu.memory_space<vmem>>, %arg3: memref<8x36xf32, #tpu.memory_space<vmem>>, %arg4: memref<1x1x2048xf32, #tpu.memory_space<vmem>>, %arg5: memref<1x8x2048xf32, #tpu.memory_space<vmem>>, %arg6: memref<1x1x8x1xf32, #tpu.memory_space<vmem>>, %arg7: memref<1x1x8x1xf32, #tpu.memory_space<vmem>>, %arg8: memref<36x2048xf32, #tpu.memory_space<vmem>>) attributes {dimension_semantics = [#tpu.dimension_semantics<parallel>, #tpu.dimension_semantics<parallel>], iteration_bounds = array<i64: 2, 1>, scalar_prefetch = 0 : i64, scratch_operands = 1 : i64, tpu.core_type = #tpu.core_type<tc>, window_params = [{transform_indices = @transform_0, window_bounds = array<i64: 1, 1, 4, 2432>}, {pipeline_mode = #tpu.pipeline_mode<synchronous>, transform_indices = @transform_1, window_bounds = array<i64: 8, 36>}, {transform_indices = @transform_2, window_bounds = array<i64: 1, 1, 2048>}, {transform_indices = @transform_3, window_bounds = array<i64: 1, 8, 2048>}, {transform_indices = @transform_4, window_bounds = array<i64: 1, 1, 8, 1>}, {transform_indices = @transform_5, window_bounds = array<i64: 1, 1, 8, 1>}]} {
    %c0 = arith.constant 0 : index
    %c0_0 = arith.constant 0 : index
    %c0_1 = arith.constant 0 : index
    %c0_2 = arith.constant 0 : index
    %0 = vector.load %arg2[%c0, %c0_0, %c0_1, %c0_2] : memref<1x1x4x2432xf32, #tpu.memory_space<vmem>>, vector<1x1x4x2048xf32>
    %1 = vector.shape_cast %0 : vector<1x1x4x2048xf32> to vector<4x2048xf32>
    %c0_3 = arith.constant 0 : index
    %c0_4 = arith.constant 0 : index
    %2 = vector.load %arg8[%c0_3, %c0_4] : memref<36x2048xf32, #tpu.memory_space<vmem>>, vector<4x2048xf32>
    tpu.vector_store %arg8[%c0_3, %c0_4], %1 {strides = array<i32>} : memref<36x2048xf32, #tpu.memory_space<vmem>>, vector<4x2048xf32>,
    %c0_5 = arith.constant 0 : index
    %c0_6 = arith.constant 0 : index
    %c0_7 = arith.constant 0 : index
    %c1 = arith.constant 1 : index
    %3 = vector.load %arg2[%c0_5, %c0_6, %c0_7, %c1] : memref<1x1x4x2432xf32, #tpu.memory_space<vmem>>, vector<1x1x4x2048xf32>
    %4 = vector.shape_cast %3 : vector<1x1x4x2048xf32> to vector<4x2048xf32>
    %c4 = arith.constant 4 : index
    %c0_8 = arith.constant 0 : index
    %5 = vector.load %arg8[%c4, %c0_8] : memref<36x2048xf32, #tpu.memory_space<vmem>>, vector<4x2048xf32>
    tpu.vector_store %arg8[%c4, %c0_8], %4 {strides = array<i32>} : memref<36x2048xf32, #tpu.memory_space<vmem>>, vector<4x2048xf32>,
    %c0_9 = arith.constant 0 : index
    %c0_10 = arith.constant 0 : index
    %c0_11 = arith.constant 0 : index
    %c2 = arith.constant 2 : index
    %6 = vector.load %arg2[%c0_9, %c0_10, %c0_11, %c2] : memref<1x1x4x2432xf32, #tpu.memory_space<vmem>>, vector<1x1x4x2048xf32>
    %7 = vector.shape_cast %6 : vector<1x1x4x2048xf32> to vector<4x2048xf32>
    %c8 = arith.constant 8 : index
    %c0_12 = arith.constant 0 : index
    %8 = vector.load %arg8[%c8, %c0_12] : memref<36x2048xf32, #tpu.memory_space<vmem>>, vector<4x2048xf32>
    tpu.vector_store %arg8[%c8, %c0_12], %7 {strides = array<i32>} : memref<36x2048xf32, #tpu.memory_space<vmem>>, vector<4x2048xf32>,
    %c0_13 = arith.constant 0 : index
    %c0_14 = arith.constant 0 : index
    %c0_15 = arith.constant 0 : index
    %c128 = arith.constant 128 : index
    %9 = vector.load %arg2[%c0_13, %c0_14, %c0_15, %c128] : memref<1x1x4x2432xf32, #tpu.memory_space<vmem>>, vector<1x1x4x2048xf32>
    %10 = vector.shape_cast %9 : vector<1x1x4x2048xf32> to vector<4x2048xf32>
    %c12 = arith.constant 12 : index
    %c0_16 = arith.constant 0 : index
    %11 = vector.load %arg8[%c12, %c0_16] : memref<36x2048xf32, #tpu.memory_space<vmem>>, vector<4x2048xf32>
    tpu.vector_store %arg8[%c12, %c0_16], %10 {strides = array<i32>} : memref<36x2048xf32, #tpu.memory_space<vmem>>, vector<4x2048xf32>,
    %c0_17 = arith.constant 0 : index
    %c0_18 = arith.constant 0 : index
    %c0_19 = arith.constant 0 : index
    %c129 = arith.constant 129 : index
    %12 = vector.load %arg2[%c0_17, %c0_18, %c0_19, %c129] : memref<1x1x4x2432xf32, #tpu.memory_space<vmem>>, vector<1x1x4x2048xf32>
    %13 = vector.shape_cast %12 : vector<1x1x4x2048xf32> to vector<4x2048xf32>
    %c16 = arith.constant 16 : index
    %c0_20 = arith.constant 0 : index
    %14 = vector.load %arg8[%c16, %c0_20] : memref<36x2048xf32, #tpu.memory_space<vmem>>, vector<4x2048xf32>
    tpu.vector_store %arg8[%c16, %c0_20], %13 {strides = array<i32>} : memref<36x2048xf32, #tpu.memory_space<vmem>>, vector<4x2048xf32>,
    %c0_21 = arith.constant 0 : index
    %c0_22 = arith.constant 0 : index
    %c0_23 = arith.constant 0 : index
    %c130 = arith.constant 130 : index
    %15 = vector.load %arg2[%c0_21, %c0_22, %c0_23, %c130] : memref<1x1x4x2432xf32, #tpu.memory_space<vmem>>, vector<1x1x4x2048xf32>
    %16 = vector.shape_cast %15 : vector<1x1x4x2048xf32> to vector<4x2048xf32>
    %c20 = arith.constant 20 : index
    %c0_24 = arith.constant 0 : index
    %17 = vector.load %arg8[%c20, %c0_24] : memref<36x2048xf32, #tpu.memory_space<vmem>>, vector<4x2048xf32>
    tpu.vector_store %arg8[%c20, %c0_24], %16 {strides = array<i32>} : memref<36x2048xf32, #tpu.memory_space<vmem>>, vector<4x2048xf32>,
    %c0_25 = arith.constant 0 : index
    %c0_26 = arith.constant 0 : index
    %c0_27 = arith.constant 0 : index
    %c256 = arith.constant 256 : index
    %18 = vector.load %arg2[%c0_25, %c0_26, %c0_27, %c256] : memref<1x1x4x2432xf32, #tpu.memory_space<vmem>>, vector<1x1x4x2048xf32>
    %19 = vector.shape_cast %18 : vector<1x1x4x2048xf32> to vector<4x2048xf32>
    %c24 = arith.constant 24 : index
    %c0_28 = arith.constant 0 : index
    %20 = vector.load %arg8[%c24, %c0_28] : memref<36x2048xf32, #tpu.memory_space<vmem>>, vector<4x2048xf32>
    tpu.vector_store %arg8[%c24, %c0_28], %19 {strides = array<i32>} : memref<36x2048xf32, #tpu.memory_space<vmem>>, vector<4x2048xf32>,
    %c0_29 = arith.constant 0 : index
    %c0_30 = arith.constant 0 : index
    %c0_31 = arith.constant 0 : index
    %c257 = arith.constant 257 : index
    %21 = vector.load %arg2[%c0_29, %c0_30, %c0_31, %c257] : memref<1x1x4x2432xf32, #tpu.memory_space<vmem>>, vector<1x1x4x2048xf32>
    %22 = vector.shape_cast %21 : vector<1x1x4x2048xf32> to vector<4x2048xf32>
    %c28 = arith.constant 28 : index
    %c0_32 = arith.constant 0 : index
    %23 = vector.load %arg8[%c28, %c0_32] : memref<36x2048xf32, #tpu.memory_space<vmem>>, vector<4x2048xf32>
    tpu.vector_store %arg8[%c28, %c0_32], %22 {strides = array<i32>} : memref<36x2048xf32, #tpu.memory_space<vmem>>, vector<4x2048xf32>,
    %c0_33 = arith.constant 0 : index
    %c0_34 = arith.constant 0 : index
    %c0_35 = arith.constant 0 : index
    %c258 = arith.constant 258 : index
    %24 = vector.load %arg2[%c0_33, %c0_34, %c0_35, %c258] : memref<1x1x4x2432xf32, #tpu.memory_space<vmem>>, vector<1x1x4x2048xf32>
    %25 = vector.shape_cast %24 : vector<1x1x4x2048xf32> to vector<4x2048xf32>
    %c32 = arith.constant 32 : index
    %c0_36 = arith.constant 0 : index
    %26 = vector.load %arg8[%c32, %c0_36] : memref<36x2048xf32, #tpu.memory_space<vmem>>, vector<4x2048xf32>
    tpu.vector_store %arg8[%c32, %c0_36], %25 {strides = array<i32>} : memref<36x2048xf32, #tpu.memory_space<vmem>>, vector<4x2048xf32>,
    %c0_37 = arith.constant 0 : index
    %c0_38 = arith.constant 0 : index
    %27 = vector.load %arg3[%c0_37, %c0_38] : memref<8x36xf32, #tpu.memory_space<vmem>>, vector<8x36xf32>
    %c0_39 = arith.constant 0 : index
    %c0_40 = arith.constant 0 : index
    %28 = vector.load %arg8[%c0_39, %c0_40] : memref<36x2048xf32, #tpu.memory_space<vmem>>, vector<36x2048xf32>
    %cst = arith.constant dense<0.000000e+00> : vector<8x2048xf32>
    %29 = tpu.matmul %27, %28, %cst {dimension_numbers = #tpu.dot_dimension_numbers<[1], [0], [0], [1], [0, 0, 1, 1], [], []>} : vector<8x36xf32>, vector<36x2048xf32>, vector<8x2048xf32> -> vector<8x2048xf32>
    %c0_41 = arith.constant 0 : index
    %c0_42 = arith.constant 0 : index
    %c0_43 = arith.constant 0 : index
    %30 = vector.load %arg5[%c0_41, %c0_42, %c0_43] : memref<1x8x2048xf32, #tpu.memory_space<vmem>>, vector<1x8x2048xf32>
    %31 = vector.shape_cast %30 : vector<1x8x2048xf32> to vector<8x2048xf32>
    %32 = vector.shape_cast %29 : vector<8x2048xf32> to vector<1x8x2048xf32>
    tpu.vector_store %arg5[%c0_41, %c0_42, %c0_43], %32 {strides = array<i32>} : memref<1x8x2048xf32, #tpu.memory_space<vmem>>, vector<1x8x2048xf32>,
    %c0_44 = arith.constant 0 : index
    %c0_45 = arith.constant 0 : index
    %c0_46 = arith.constant 0 : index
    %33 = vector.load %arg4[%c0_44, %c0_45, %c0_46] : memref<1x1x2048xf32, #tpu.memory_space<vmem>>, vector<1x1x2048xf32>
    %34 = vector.shape_cast %33 : vector<1x1x2048xf32> to vector<1x2048xf32>
    %35 = vector.broadcast %34 : vector<1x2048xf32> to vector<8x2048xf32>
    %36 = arith.mulf %29, %35 : vector<8x2048xf32>
    %cst_47 = arith.constant dense<0.000000e+00> : vector<8xf32>
    %37 = vector.multi_reduction <add>, %36, %cst_47 [1] : vector<8x2048xf32> to vector<8xf32>
    %38 = vector.shape_cast %37 : vector<8xf32> to vector<8x1xf32>
    %c0_48 = arith.constant 0 : index
    %c0_49 = arith.constant 0 : index
    %c0_50 = arith.constant 0 : index
    %c0_51 = arith.constant 0 : index
    %39 = vector.load %arg6[%c0_48, %c0_49, %c0_50, %c0_51] : memref<1x1x8x1xf32, #tpu.memory_space<vmem>>, vector<1x1x8x1xf32>
    %40 = vector.shape_cast %39 : vector<1x1x8x1xf32> to vector<8x1xf32>
    %41 = vector.shape_cast %38 : vector<8x1xf32> to vector<1x1x8x1xf32>
    tpu.vector_store %arg6[%c0_48, %c0_49, %c0_50, %c0_51], %41 {strides = array<i32>} : memref<1x1x8x1xf32, #tpu.memory_space<vmem>>, vector<1x1x8x1xf32>,
    %42 = arith.mulf %36, %29 : vector<8x2048xf32>
    %cst_52 = arith.constant dense<0.000000e+00> : vector<8xf32>
    %43 = vector.multi_reduction <add>, %42, %cst_52 [1] : vector<8x2048xf32> to vector<8xf32>
    %44 = vector.shape_cast %43 : vector<8xf32> to vector<8x1xf32>
    %c0_53 = arith.constant 0 : index
    %c0_54 = arith.constant 0 : index
    %c0_55 = arith.constant 0 : index
    %c0_56 = arith.constant 0 : index
    %45 = vector.load %arg7[%c0_53, %c0_54, %c0_55, %c0_56] : memref<1x1x8x1xf32, #tpu.memory_space<vmem>>, vector<1x1x8x1xf32>
    %46 = vector.shape_cast %45 : vector<1x1x8x1xf32> to vector<8x1xf32>
    %47 = vector.shape_cast %44 : vector<8x1xf32> to vector<1x1x8x1xf32>
    tpu.vector_store %arg7[%c0_53, %c0_54, %c0_55, %c0_56], %47 {strides = array<i32>} : memref<1x1x8x1xf32, #tpu.memory_space<vmem>>, vector<1x1x8x1xf32>,
    return
  }
  func.func @transform_0(%arg0: i32, %arg1: i32) -> (i32, i32, i32, i32) {
    %c0_i32 = arith.constant 0 : i32
    %c0_i32_0 = arith.constant 0 : i32
    %c0_i32_1 = arith.constant 0 : i32
    return %arg0, %arg1, %c0_i32, %c0_i32_0 : i32, i32, i32, i32
  }
  func.func @transform_1(%arg0: i32, %arg1: i32) -> (i32, i32) {
    %c0_i32 = arith.constant 0 : i32
    %c0_i32_0 = arith.constant 0 : i32
    %c0_i32_1 = arith.constant 0 : i32
    return %c0_i32, %c0_i32_0 : i32, i32
  }
  func.func @transform_2(%arg0: i32, %arg1: i32) -> (i32, i32, i32) {
    %c0_i32 = arith.constant 0 : i32
    %c0_i32_0 = arith.constant 0 : i32
    %c0_i32_1 = arith.constant 0 : i32
    return %arg1, %c0_i32, %c0_i32_0 : i32, i32, i32
  }
  func.func @transform_3(%arg0: i32, %arg1: i32) -> (i32, i32, i32) {
    %c0_i32 = arith.constant 0 : i32
    %c0_i32_0 = arith.constant 0 : i32
    return %arg0, %c0_i32, %arg1 : i32, i32, i32
  }
  func.func @transform_4(%arg0: i32, %arg1: i32) -> (i32, i32, i32, i32) {
    %c0_i32 = arith.constant 0 : i32
    %c0_i32_0 = arith.constant 0 : i32
    %c0_i32_1 = arith.constant 0 : i32
    return %arg0, %arg1, %c0_i32, %c0_i32_0 : i32, i32, i32, i32
  }
  func.func @transform_5(%arg0: i32, %arg1: i32) -> (i32, i32, i32, i32) {
    %c0_i32 = arith.constant 0 : i32
    %c0_i32_0 = arith.constant 0 : i32
    %c0_i32_1 = arith.constant 0 : i32
    return %arg0, %arg1, %c0_i32, %c0_i32_0 : i32, i32, i32, i32
  }
}

</mosaic_0001>

<bundles_post_ra>
// kernel: tpu_custom_call.1
= control target key start
LH: loop header
LB: loop body
LE: loop exit
PB: predicated region body
PF: predicated region fallthrough
CT: control target
= control target key end

     0   :  { %s3419_s0 = inlined_call_operand.hbm [shape: f32[2,1,4,2432], index: 0, kind: input, shape index: {}]   ;;  %s3420_s1 = inlined_call_operand.hbm [shape: f32[8,36], index: 1, kind: input, shape index: {}]   ;;  %s3421_s2 = inlined_call_operand.hbm [shape: f32[1,1,2048], index: 2, kind: input, shape index: {}]   ;;  %s3422_s3 = inlined_call_operand.hbm [shape: f32[2,8,2048], index: 3, kind: output, shape index: {0}]   ;;  %s3423_s4 = inlined_call_operand.vmem [shape: f32[2,1,8,1], index: 4, kind: output, shape index: {1}]   ;;  %s3424_s5 = inlined_call_operand.vmem [shape: f32[2,1,8,1], index: 5, kind: output, shape index: {2}]  }
   0x1   :  { %3429 = sst [smem:[#allocation13_spill]] %s3420_s1 }
   0x2   :  { %3430 = sst [smem:[#allocation14_spill]] %s3421_s2 }
   0x3   :  { %11 = vsyncpa [#allocation4], 0 }
   0x4   :  { %13 = vsyncpa [#allocation4 + $0x1], 0 }
   0x5   :  { %14 = vsyncpa [#allocation7], 0 }
   0x6   :  { %15 = vsyncpa [#allocation5], 0 }
   0x7   :  { %17 = vsyncpa [#allocation5 + $0x1], 0  ;;  %s2578_s18 = smov 0   ;;  %s2580_s19 = smov 0  }
   0x8   :  { %s2582_s20 = smov 0   ;;  %s2584_s21 = smov 0  }
   0x9   :  { %s2586_s22 = smov 0   ;;  %s2588_s23 = smov 0  }
   0xa LB: > { %s2202_s24 = sadd.s32 4294967295, %s2539_s23   ;;  %s2203_s25 = sadd.s32 4294967294, %s2539_s23   ;;  %s2539_s23 = sphi %s2588_s23, %s23_s23   ;;  %s2535_s22 = sphi %s2586_s22, %s3451_s22   ;;  %s2531_s21 = sphi %s2584_s21, %s3450_s21   ;;  %s2527_s20 = sphi %s2582_s20, %s3449_s20   ;;  %s2523_s19 = sphi %s2580_s19, %s3448_s19   ;;  %s2519_s18 = sphi %s2578_s18, %s3447_s18  }
   0xb   : > { %p57_p0 = scmp.ne.s32.totalorder %s2523_s19, %s2519_s18  ;;  %p2612_p1 = scmp.eq.s32.totalorder %s2202_s24, 0 }
   0xc   : > { %p2616_p2 = scmp.eq.s32.totalorder %s2202_s24, 1  ;;  %p136_p3 = scmp.eq.s32.totalorder %s2203_s25, 1 }
   0xd   : > { %s3431_s26 = scalar_select %p2612_p1, 1, 0 }
   0xe   : > { %s3432_s27 = scalar_select %p2616_p2, 1, 0 }
   0xf   : > { %p2622_p4 = por %p2612_p1, %p57_p0  ;;  %p2204_p5 = scmp.ge.s32.totalorder %s2539_s23, 1 }
  0x10   : > { %p2627_p6 = por %p136_p3, %p57_p0  ;;  %p199_p7 = scmp.lt.s32.totalorder %s2539_s23, 3 }
  0x11   : > { %s3433_s28 = scalar_select %p2622_p4, 1, 0 }
  0x12   : > { %s3434_s29 = scalar_select %p2627_p6, 1, 0 }
  0x13   : > { %p2632_p8 = pnand %p2204_p5, %p199_p7  ;;  %s2541_s6 = smov [#allocation6]  }
  0x14   : > { %s212_s7 = sshll.u32 %s2541_s6, 4  ;;  %s2542_s8 = smov [#allocation8]   ;;  %s213_s7 = int_to_ptr.vmem [resolvable:$true] %s212_s7 }
  0x15   : > { %s3435_s30 = scalar_select %p2632_p8, 1, 0 }
  0x16   : > { %p2260_p10 = pneg %p2632_p8  ;;  %s226_s9 = sshll.u32 %s2542_s8, 4  ;;  %s227_s9 = int_to_ptr.vmem [resolvable:$true] %s226_s9 }
  0x17   : > { %s2386_s11 = scalar_lea.vmem %s213_s7, 128  ;;  %p2394_p5 = scmp.lt.s32.totalorder %s213_s7, %s213_s7 }
  0x18   : > { %p2641_p11 = pnand %p2260_p10, %p2612_p1  ;;  %p2387_p13 = scmp.ne.s32.totalorder %s213_s7, %s2386_s11 }
  0x19   : > { %p2395_p7 = scmp.lt.s32.totalorder %s2386_s11, %s2386_s11 }
  0x1a   : > { %p2377_p12 = pneg %p2641_p11 }
  0x1b   : > { %p2396_p9 = por %p2395_p7, %p2394_p5 }
  0x1c   : > { %p2389_p0 = pnand %p2387_p13, %p2377_p12 }
  0x1e   : > { %p2390_p3 = pneg %p2389_p0 }
  0x20   : > { %p2397_p6 = pnand %p2396_p9, %p2390_p3 }
  0x22   : > { %2400 = shalt.err (!%p2397_p6)
}
  0x23   : > { %s3437_s1 = sld [smem:[#allocation13_spill]]  ;;  %s2412_s14 = scalar_lea.vmem %s227_s9, 256 }
  0x24   : > { %p2413_p10 = scmp.ne.s32.totalorder %s227_s9, %s2412_s14  ;;  %p2420_p13 = scmp.lt.s32.totalorder %s227_s9, %s227_s9 }
  0x25   : > { %p2421_p0 = scmp.lt.s32.totalorder %s2412_s14, %s2412_s14 }
  0x26   : > { %p2415_p1 = pnand %p2413_p10, %p2377_p12 }
  0x27   : > { %p2422_p8 = por %p2421_p0, %p2420_p13 }
  0x28   : > { %p2416_p4 = pneg %p2415_p1 }
  0x29   : > { %2263 = dma.hbm_to_vmem [thread:$0]  (!%p2641_p11), %s3437_s1, 128, %s213_s7, [#allocation7]  }
  0x2a   : > { %p2423_p2 = pnand %p2422_p8, %p2416_p4 }
  0x2c   : > { %2426 = shalt.err (!%p2423_p2)
}
  0x2d   : > { %s3438_s2 = sld [smem:[#allocation14_spill]]  ;;  %s35_s17 = sadd.s32 1, %s2535_s22 }
  0x2e   : > { %s44_s24 = sadd.s32 1, %s2527_s20  ;;  %p37_p1 = scmp.ge.s32.totalorder %s35_s17, 2 }
  0x2f   : > { %p51_p2 = scmp.ne.s32.totalorder %s2527_s20, %s2523_s19  ;;  %p52_p4 = scmp.eq.s32.totalorder %s2539_s23, 0 }
  0x30   : > { %p2277_p6 = scmp.lt.s32.totalorder %s2539_s23, 2  ;;  %s3453_s17 = smov (%p37_p1, %s35_s17), 0 }
  0x31   : > { %p53_p8 = por %p52_p4, %p51_p2  ;;  %p3439_p9 = scmp.ne.s32.totalorder %s3432_s27, 0 }
  0x32   : > { %s39_s6 = ssub.s32 %s2535_s22, %s3453_s17  ;;  %s237_s7 = sand.u32 1, %s2527_s20  }
  0x33   : > { %2266 = dma.hbm_to_vmem [thread:$0]  (!%p2641_p11), %s3438_s2, 256, %s227_s9, [#allocation7]  }
  0x34   : > { %p2673_p12 = por %p3439_p9, %p51_p2  ;;  %p42_p3 = scmp.eq.s32.totalorder %s39_s6, 0 }
  0x35   : > { %s2245_s8 = smul.u32 76, %s237_s7  ;;  %p2680_p11 = pnand %p2277_p6, %p53_p8 }
  0x36   : > { %s2685_s10 = scalar_select %p42_p3, %s2527_s20, %s44_s24  }
  0x37   : > { %s2246_s11 = smul.u32 1216, %s2535_s22  ;;  %s241_s12 = scalar_lea.vmem [#allocation3], %s2245_s8 }
  0x38   : > { %s251_s13 = sshll.u32 %s241_s12, 4  ;;  %s238_s16 = scalar_lea.sflag [#allocation4], %s237_s7  ;;  %s252_s13 = int_to_ptr.vmem [resolvable:$true] %s251_s13 }
  0x39   : > { %s249_s15 = scalar_lea.hbm %s3419_s0, %s2246_s11  ;;  %p2429_p5 = pneg %p2680_p11 }
  0x3a   : > { %s2440_s6 = scalar_lea.vmem %s252_s13, 1216  ;;  %s2543_s1 = smov [#allocation3]  }
  0x3b   : > { %p2441_p7 = scmp.ne.s32.totalorder %s252_s13, %s2440_s6  ;;  %s2445_s2 = sshll.u32 %s2543_s1, 4  ;;  %s2446_s2 = int_to_ptr.vmem [resolvable:$false] %s2445_s2 }
  0x3c   : > { %s2447_s24 = scalar_lea.vmem %s2446_s2, 2432  ;;  %p2448_p0 = scmp.lt.s32.totalorder %s252_s13, %s2446_s2 }
  0x3d   : > { %p2443_p10 = pnand %p2441_p7, %p2429_p5  ;;  %p2449_p1 = scmp.lt.s32.totalorder %s2447_s24, %s2440_s6 }
  0x3f   : > { %p2444_p13 = pneg %p2443_p10  ;;  %p2450_p2 = por %p2449_p1, %p2448_p0 }
  0x41   : > { %p2451_p4 = pnand %p2450_p2, %p2444_p13 }
  0x43   : > { %2454 = shalt.err (!%p2451_p4)
}
  0x44   : > { %2270 = dma.hbm_to_vmem [thread:$0]  (!%p2680_p11), %s249_s15, 1216, %s252_s13, %s238_s16  }
  0x45   : > { %p3442_p6 = scmp.ne.s32.totalorder %s3435_s30, 0 }
  0x46   : > { %s2698_s7 = sand.u32 (!%p3442_p6), 1, %s2523_s19   ;;  %p3443_p8 = scmp.ne.s32.totalorder (!%p3442_p6), %s3433_s28, 0 }
  0x47   : > { %260 = sbr.rel (%p3442_p6) target bundleno = 748 (0x2ec), region = 32  ;;  %s263_s8 = scalar_lea.sflag (!%p3442_p6), [#allocation4], %s2698_s7 }
  0x48   : > { %s2247_s1 = smul.u32 (!%p3442_p6), 76, %s2698_s7 }
  0x4a   : > { %s2702_s11 = scalar_lea.vmem (!%p3442_p6), [#allocation3], %s2247_s1 }
  0x4c   : > { %2506 = dma.done.wait (%p3443_p8), %s263_s8, 1216  }
  0x4d   : > { %2508 = vsyncadd (%p3443_p8), %s263_s8, 4294966080  ;;  %p3444_p9 = scmp.ne.s32.totalorder %s3431_s26, 0 }
  0x4f   : > { %2510 = dma.done.wait (%p3444_p9), [#allocation7], 384  }
  0x50   : > { %2512 = vsyncadd (%p3444_p9), [#allocation7], 4294966912  ;;  %v2713_v0 = vld [vmem:[%s2702_s11 + $0x10] sm:$0xff]  ;;  %v2716_v1 = vld [vmem:[%s2702_s11 + $0x8] sm:$0xff]  ;;  %s2544_s2 = smov 126   ;;  %s2545_s26 = smov 127  }
  0x51   : > { %v2719_v2 = vld [vmem:[%s2702_s11 + $0xc] sm:$0xff]  ;;  %1049 = vrot.lane.b32.xlu0 %v2713_v0, %s2544_s2  ;;  %v2725_v3 = vcombine.high %v2713_v0, %v2713_v0  ;;  %1045 = vrot.lane.b32.xlu1 %v2716_v1, %s2544_s2  ;;  %v2731_v4 = vcombine.high %v2716_v1, %v2716_v1  ;;  %v2734_v5 = vld [vmem:[%s2702_s11 + $0x4] sm:$0xff]  ;;  %894 = vst [vmem:[#allocation2 + $0x78] sm:$0xf] %v2716_v1  ;;  %896 = vst [vmem:[#allocation2 + $0xa0] sm:$0xf] %v2713_v0 }
  0x52   : > { %v2737_v6 = vld [vmem:[%s2702_s11 + $0x18] sm:$0xff]  ;;  %632 = vst [vmem:[#allocation2 + $0x160] sm:$0xf0] %v2719_v2  ;;  %364 = vst [vmem:[#allocation2 + $0x40] sm:$0xf] %v2716_v1  ;;  %v772_v7 = vcombine.low %v2719_v2, %v2719_v2  ;;  %v2747_v8 = vld [vmem:[%s2702_s11] sm:$0xff]  ;;  %v771_v11 = vcombine.low %v2734_v5, %v2734_v5  ;;  %v928_v21 = vcombine.low %v2716_v1, %v2716_v1 }
  0x53   : > { %366 = vst [vmem:[#allocation2 + $0xe8] sm:$0xf] %v2713_v0  ;;  %v2750_v9 = vld [vmem:[%s2702_s11 + $0x14] sm:$0xff]  ;;  %v2753_v10 = vld [vmem:[%s2702_s11 + $0x20] sm:$0xff]  ;;  %630 = vst [vmem:[#allocation2 + $0x30] sm:$0xf0] %v2734_v5  ;;  %v2762_v12 = vcombine.high %v2737_v6, %v2737_v6  ;;  %v506_v13 = vcombine.high %v2747_v8, %v2747_v8  ;;  %v2807_v22 = vcombine.low %v2713_v0, %v2713_v0 }
  0x54   : > { %898 = vst [vmem:[#allocation2 + $0x58] sm:$0xf] %v2737_v6  ;;  %368 = vst [vmem:[#allocation2 + $0x70] sm:$0xf] %v2737_v6  ;;  %v2767_v14 = vld [vmem:[%s2702_s11 + $0x1c] sm:$0xff]  ;;  %v2770_v15 = vld [vmem:[%s2702_s11 + $0x28] sm:$0xff]  ;;  %v2784_v17 = vcombine.low %v2750_v9, %v2750_v9  ;;  %v2788_v18 = vcombine.high %v2753_v10, %v2753_v10  ;;  %v663_v28 = vcombine.high %v2734_v5, %v2734_v5 }
  0x55   : > { %v2773_v16 = vld [vmem:[%s2702_s11 + $0x24] sm:$0xff]  ;;  %895 = vst [vmem:[#allocation2 + $0x1f0] sm:$0xf] %v2731_v4  ;;  %897 = vst [vmem:[#allocation2 + $0x1f8] sm:$0xf] %v2725_v3  ;;  %v2791_v19 = vld [vmem:[%s2702_s11 + $0x30] sm:$0xff]  ;;  %1047 = vrot.lane.b32.xlu0 %v2731_v4, %s2544_s2  ;;  %939 = vrot.lane.b32.xlu1 %v2716_v1, %s2545_s26  ;;  %v2811_v23 = vcombine.low %v2767_v14, %v2767_v14  ;;  %v2819_v24 = vcombine.high %v2770_v15, %v2770_v15 }
  0x56   : > { %362 = vst [vmem:[#allocation2 + $0xc8] sm:$0xf] %v2747_v8  ;;  %365 = vst [vmem:[#allocation2 + $0x28] sm:$0xf] %v2731_v4  ;;  %v2794_v20 = vld [vmem:[%s2702_s11 + $0x2c] sm:$0xff]  ;;  %v2823_v25 = vcombine.low %v2773_v16, %v2773_v16  ;;  %v2829_v26 = vcombine.high %v2791_v19, %v2791_v19  ;;  %v2849_v29 = vld [vmem:[%s2702_s11 + $0x34] sm:$0xff]  ;;  %v930_v33 = vcombine.low %v2737_v6, %v2737_v6 }
  0x57   : > { %634 = vst [vmem:[#allocation2 + $0x1a0] sm:$0xf0] %v2750_v9  ;;  %900 = vst [vmem:[#allocation2 + $0x260] sm:$0xf] %v2753_v10  ;;  %v2833_v27 = vcombine.low %v2794_v20, %v2794_v20  ;;  %v2854_v30 = vcombine.low %v2849_v29, %v2849_v29  ;;  %v2868_v31 = vld [vmem:[%s2702_s11 + $0x40] sm:$0xff]  ;;  %v664_v34 = vcombine.high %v2719_v2, %v2719_v2  ;;  %v2546_v38 = vmov 0.0  }
  0x58   : > { %367 = vst [vmem:[#allocation2 + $0xf0] sm:$0xf] %v2725_v3  ;;  %631 = vst [vmem:[#allocation2 + $0x10] sm:$0xf0] %v772_v7  ;;  %v2872_v32 = vcombine.high %v2868_v31, %v2868_v31  ;;  %v2891_v35 = vld [vmem:[%s2702_s11 + $0x3c] sm:$0xff]  ;;  %v396_v37 = vcombine.low %v2747_v8, %v2747_v8  ;;  %1325 = vmatprep.mubr.f32.mxu0 %v2546_v38  ;;  %1396 = vmatprep.mubr.f32.mxu1 %v2546_v38  ;;  %vm548_vm0 = vcmask 1031168  }
  0x59   : > { %636 = vst [vmem:[#allocation2 + $0x218] sm:$0xf0] %v2767_v14  ;;  %902 = vst [vmem:[#allocation2 + $0x1b8] sm:$0xf] %v2770_v15  ;;  %941 = vrot.lane.b32.xlu0 %v2807_v22, %s2545_s26  ;;  %937 = vrot.lane.b32.xlu1 %v928_v21, %s2545_s26  ;;  %v2896_v36 = vcombine.low %v2891_v35, %v2891_v35  ;;  %v931_v39 = vcombine.low %v2753_v10, %v2753_v10  ;;  %vm439_vm1 = vcmask 1039360   ;;  %v2997_v51 = vld [vmem:[%s2702_s11 + $0x38] sm:$0xff] }
  0x5a   : > { %638 = vst [vmem:[#allocation2 + $0x48] sm:$0xf0] %v2773_v16  ;;  %629 = vst [vmem:[#allocation2 + $0x80] sm:$0xf0] %v771_v11  ;;  %v665_v40 = vcombine.high %v2750_v9, %v2750_v9  ;;  %v2948_v41 = vcombine.low %v2770_v15, %v2770_v15  ;;  %v666_v42 = vcombine.high %v2767_v14, %v2767_v14  ;;  %v334_v54 = vld [vmem:[%s2702_s11 + $0x20] sm:$0xff]  ;;  %vm1212_vm2 = vcmask 1043456  }
  0x5b   : > { %363 = vst [vmem:[#allocation2 + $0x8] sm:$0xf] %v506_v13  ;;  %899 = vst [vmem:[#allocation2 + $0x258] sm:$0xf] %v2762_v12  ;;  %v2979_v43 = vcombine.low %v2791_v19, %v2791_v19  ;;  %v667_v44 = vcombine.high %v2773_v16, %v2773_v16  ;;  %v350_v57 = vcombine.high %v334_v54, %v334_v54  ;;  %vm1208_vm3 = vcmask 293888   ;;  %s2212_s28 = sshll.u32 %s2698_s7, 7 }
  0x5c   : > { %369 = vst [vmem:[#allocation2 + $0x120] sm:$0xf] %v2762_v12  ;;  %904 = vst [vmem:[#allocation2 + $0xd0] sm:$0xf] %v2791_v19  ;;  %v3021_v63 = vcombine.low %v2997_v51, %v2997_v51  ;;  %s3330_s30 = scalar_lea.vmem [#allocation9], %s2212_s28  ;;  %s2244_s9 = sshll.u32 %s2531_s21, 11 }
  0x5d   : > { %640 = vst [vmem:[#allocation2 + $0x238] sm:$0xf0] %v2794_v20  ;;  %633 = vst [vmem:[#allocation2 + $0x1d8] sm:$0xf0] %v2784_v17  ;;  %675 = vrot.lane.b32.xlu1 %v2719_v2, %s2545_s26  ;;  %673 = vrot.lane.b32.xlu0 %v663_v28, %s2545_s26  ;;  %s2027_s14 = scalar_lea.hbm %s3422_s3, %s2244_s9  ;;  %s2029_s27 = sshll.u32 %s3330_s30, 4  ;;  %s2030_s27 = int_to_ptr.vmem [resolvable:$true] %s2029_s27 }
  0x5e   : > { %901 = vst [vmem:[#allocation2 + $0x100] sm:$0xf] %v2788_v18  ;;  %635 = vst [vmem:[#allocation2 + $0x248] sm:$0xf0] %v2811_v23  ;;  %s1999_s15 = scalar_lea.sflag [#allocation5], %s2698_s7  ;;  %s2455_s16 = scalar_lea.vmem %s2030_s27, 2048 }
  0x5f   : > { %903 = vst [vmem:[#allocation2 + $0x168] sm:$0xf] %v2819_v24  ;;  %637 = vst [vmem:[#allocation2 + $0x190] sm:$0xf0] %v2823_v25  ;;  %p2456_p3 = scmp.ne.s32.totalorder %s2030_s27, %s2455_s16  ;;  %s2547_s6 = smov [#allocation9]  }
  0x60   : > { %905 = vst [vmem:[#allocation2 + $0x278] sm:$0xf] %v2829_v26  ;;  %639 = vst [vmem:[#allocation2 + $0x68] sm:$0xf0] %v2833_v27  ;;  %s2459_s24 = sshll.u32 %s2547_s6, 4  ;;  %s2460_s24 = int_to_ptr.vmem [resolvable:$false] %s2459_s24 }
  0x61   : > { %642 = vst [vmem:[#allocation2 + $0x250] sm:$0xf0] %v2849_v29  ;;  %784 = vrot.lane.b32.xlu1 %v772_v7, %s2544_s2  ;;  %782 = vrot.lane.b32.xlu0 %v2734_v5, %s2544_s2  ;;  %641 = vst [vmem:[#allocation2 + $0x188] sm:$0xf0] %v2854_v30  ;;  %p2457_p11 = pnand %p2456_p3, %p2673_p12  ;;  %s2461_s1 = scalar_lea.vmem %s2460_s24, 4096 }
  0x62   : > { %908 = vst [vmem:[#allocation2 + $0x130] sm:$0xf] %v2868_v31  ;;  %909 = vst [vmem:[#allocation2 + $0x110] sm:$0xf] %v2872_v32  ;;  %p2462_p7 = scmp.lt.s32.totalorder %s2030_s27, %s2460_s24  ;;  %p2463_p10 = scmp.lt.s32.totalorder %s2461_s1, %s2455_s16 }
  0x63   : > { %644 = vst [vmem:[#allocation2 + $0x268] sm:$0xf0] %v2891_v35  ;;  %643 = vst [vmem:[#allocation2 + $0xb8] sm:$0xf0] %v2896_v36  ;;  %p2458_p5 = pneg %p2457_p11 }
  0x64   : > { %370 = vst [vmem:[#allocation2 + $0xd8] sm:$0xf] %v334_v54  ;;  %371 = vst [vmem:[#allocation2 + $0x148] sm:$0xf] %v350_v57  ;;  %p2464_p13 = por %p2463_p10, %p2462_p7 }
  0x65   : > { %1053 = vrot.lane.b32.xlu1 %v2737_v6, %s2544_s2  ;;  %1051 = vrot.lane.b32.xlu0 %v2725_v3, %s2544_s2 }
  0x66   : > { %p2465_p0 = pnand %p2464_p13, %p2458_p5 }
  0x69   : > { %780 = vrot.lane.b32.xlu1 %v771_v11, %s2544_s2  ;;  %671 = vrot.lane.b32.xlu0 %v2734_v5, %s2545_s26 }
  0x6d   : > { %518 = vrot.lane.b32.xlu1 %v2716_v1, %s2544_s2  ;;  %516 = vrot.lane.b32.xlu0 %v506_v13, %s2544_s2 }
  0x71   : > { %945 = vrot.lane.b32.xlu1 %v930_v33, %s2545_s26  ;;  %943 = vrot.lane.b32.xlu0 %v2713_v0, %s2545_s26 }
  0x75   : > { %514 = vrot.lane.b32.xlu0 %v2747_v8, %s2544_s2  ;;  %407 = vrot.lane.b32.xlu1 %v2747_v8, %s2545_s26 }
  0x79   : > { %409 = vrot.lane.b32.xlu0 %v928_v21, %s2545_s26  ;;  %677 = vrot.lane.b32.xlu1 %v664_v34, %s2545_s26 }
  0x7d   : > { %679 = vrot.lane.b32.xlu0 %v2750_v9, %s2545_s26  ;;  %786 = vrot.lane.b32.xlu1 %v2719_v2, %s2544_s2 }
  0x81   : > { %788 = vrot.lane.b32.xlu0 %v2784_v17, %s2544_s2  ;;  %405 = vrot.lane.b32.xlu1 %v396_v37, %s2545_s26 }
  0x85   : > { %520 = vrot.lane.b32.xlu0 %v2731_v4, %s2544_s2  ;;  %522 = vrot.lane.b32.xlu1 %v2713_v0, %s2544_s2 }
  0x89   : > { %1055 = vrot.lane.b32.xlu0 %v2762_v12, %s2544_s2  ;;  %1057 = vrot.lane.b32.xlu1 %v2753_v10, %s2544_s2 }
  0x8d   : > { %411 = vrot.lane.b32.xlu0 %v2716_v1, %s2545_s26  ;;  %413 = vrot.lane.b32.xlu1 %v2807_v22, %s2545_s26 }
  0x91   : > { %947 = vrot.lane.b32.xlu0 %v2737_v6, %s2545_s26  ;;  %949 = vrot.lane.b32.xlu1 %v931_v39, %s2545_s26 }
  0x95   : > { %681 = vrot.lane.b32.xlu0 %v665_v40, %s2545_s26  ;;  %683 = vrot.lane.b32.xlu1 %v2767_v14, %s2545_s26 }
  0x99   : > { %790 = vrot.lane.b32.xlu0 %v2750_v9, %s2544_s2  ;;  %792 = vrot.lane.b32.xlu1 %v2811_v23, %s2544_s2  ;;  %v668_v9 = vcombine.high %v2794_v20, %v2794_v20 }
  0x9d   : > { %1059 = vrot.lane.b32.xlu0 %v2788_v18, %s2544_s2  ;;  %1061 = vrot.lane.b32.xlu1 %v2770_v15, %s2544_s2 }
  0xa1   : > { %524 = vrot.lane.b32.xlu0 %v2725_v3, %s2544_s2  ;;  %526 = vrot.lane.b32.xlu1 %v2737_v6, %s2544_s2 }
  0xa5   : > { %951 = vrot.lane.b32.xlu0 %v2753_v10, %s2545_s26  ;;  %953 = vrot.lane.b32.xlu1 %v2948_v41, %s2545_s26 }
  0xa9   : > { %415 = vrot.lane.b32.xlu0 %v2713_v0, %s2545_s26  ;;  %417 = vrot.lane.b32.xlu1 %v930_v33, %s2545_s26  ;;  %v868_v33 = vld [vmem:[%s2702_s11 + $0x38] sm:$0xff] }
  0xaa   : > { %v884_v40 = vcombine.high %v868_v33, %v868_v33  ;;  %906 = vst [vmem:[#allocation2 + $0x210] sm:$0xf] %v868_v33  ;;  %376 = vst [vmem:[#allocation2 + $0x140] sm:$0xf] %v868_v33 }
  0xac   : > { %907 = vst [vmem:[#allocation2 + $0x180] sm:$0xf] %v884_v40  ;;  %377 = vst [vmem:[#allocation2 + $0x200] sm:$0xf] %v884_v40 }
  0xad   : > { %685 = vrot.lane.b32.xlu0 %v666_v42, %s2545_s26  ;;  %687 = vrot.lane.b32.xlu1 %v2773_v16, %s2545_s26 }
  0xb1   : > { %794 = vrot.lane.b32.xlu0 %v2767_v14, %s2544_s2  ;;  %796 = vrot.lane.b32.xlu1 %v2823_v25, %s2544_s2 }
  0xb5   : > { %528 = vrot.lane.b32.xlu0 %v2762_v12, %s2544_s2  ;;  %530 = vrot.lane.b32.xlu1 %v2753_v10, %s2544_s2 }
  0xb9   : > { %1063 = vrot.lane.b32.xlu0 %v2819_v24, %s2544_s2  ;;  %1065 = vrot.lane.b32.xlu1 %v2791_v19, %s2544_s2 }
  0xbd   : > { %419 = vrot.lane.b32.xlu0 %v2737_v6, %s2545_s26  ;;  %421 = vrot.lane.b32.xlu1 %v931_v39, %s2545_s26 }
  0xc1   : > { %955 = vrot.lane.b32.xlu0 %v2770_v15, %s2545_s26  ;;  %957 = vrot.lane.b32.xlu1 %v2979_v43, %s2545_s26 }
  0xc3   : > { %v1050_v45 = vpop.permute.xlu0 %1049  ;;  %v1046_v46 = vpop.permute.xlu1 %1045 }
  0xc5   : > { %689 = vrot.lane.b32.xlu0 %v667_v44, %s2545_s26  ;;  %691 = vrot.lane.b32.xlu1 %v2794_v20, %s2545_s26 }
  0xc7   : > { %v1048_v47 = vpop.permute.xlu0 %1047  ;;  %v940_v48 = vpop.permute.xlu1 %939 }
  0xc8   : > { %v1079_v49 = vsel %vm548_vm0, %v1046_v46, %v1048_v47  ;;  %v1080_v50 = vsel %vm548_vm0, %v1048_v47, %v1050_v45 }
  0xc9   : > { %1111 = vst [vmem:[#allocation2 + $0xa8] sm:$0xf] %v1079_v49  ;;  %1112 = vst [vmem:[#allocation2 + $0x60] sm:$0xf] %v1080_v50  ;;  %798 = vrot.lane.b32.xlu0 %v2773_v16, %s2544_s2  ;;  %800 = vrot.lane.b32.xlu1 %v2833_v27, %s2544_s2  ;;  %v935_v50 = vcombine.low %v2868_v31, %v2868_v31 }
  0xcb   : > { %v2999_v52 = vpop.permute.xlu0 %941  ;;  %v938_v53 = vpop.permute.xlu1 %937 }
  0xcc   : > { %v972_v55 = vsel %vm439_vm1, %v940_v48, %v2999_v52  ;;  %v971_v56 = vsel %vm439_vm1, %v938_v53, %v940_v48 }
  0xcd   : > { %1004 = vst [vmem:[#allocation2 + $0x1f0] sm:$0xf0] %v972_v55  ;;  %1003 = vst [vmem:[#allocation2 + $0x78] sm:$0xf0] %v971_v56  ;;  %1067 = vrot.lane.b32.xlu0 %v2829_v26, %s2544_s2  ;;  %1069 = vrot.lane.b32.xlu1 %v2997_v51, %s2544_s2 }
  0xcf   : > { %v3009_v58 = vpop.permute.xlu1 %675  ;;  %v674_v59 = vpop.permute.xlu0 %673 }
  0xd0   : > { %v706_v60 = vsel %vm439_vm1, %v674_v59, %v3009_v58  ;;  %v1193_v61 = vld [vmem:[#allocation2 + $0x60] sm:$0xf]  ;;  %v1192_v62 = vld [vmem:[#allocation2 + $0xa8] sm:$0xf] }
  0xd1   : > { %738 = vst [vmem:[#allocation2 + $0x98] sm:$0xf] %v706_v60  ;;  %2215 = vmatprep.subr.msk.mxu0 %vm1212_vm2, %v1193_v61  ;;  %532 = vrot.lane.b32.xlu0 %v2788_v18, %s2544_s2  ;;  %v335_v18 = vld [vmem:[%s2702_s11 + $0x28] sm:$0xff] }
  0xd2   : > { %534 = vrot.lane.b32.xlu1 %v2770_v15, %s2544_s2  ;;  %2216 = vmatpush1.msk.msra.mxu0 %vm1212_vm2, %v1192_v62  ;;  %v351_v25 = vcombine.high %v335_v18, %v335_v18  ;;  %372 = vst [vmem:[#allocation2 + $0x158] sm:$0xf] %v335_v18 }
  0xd3   : > { %v3023_v0 = vpop.permute.xlu1 %784  ;;  %v783_v1 = vpop.permute.xlu0 %782 }
  0xd4   : > { %v815_v2 = vsel %vm548_vm0, %v783_v1, %v3023_v0  ;;  %v1177_v3 = vld [vmem:[#allocation2 + $0x1f0] sm:$0xff]  ;;  %v1176_v4 = vld [vmem:[#allocation2 + $0x78] sm:$0xff]  ;;  %373 = vst [vmem:[#allocation2 + $0x108] sm:$0xf] %v351_v25 }
  0xd5   : > { %847 = vst [vmem:[#allocation2 + $0x98] sm:$0xf0] %v815_v2  ;;  %1285 = vmatprep.subr.mxu0 %v1177_v3  ;;  %959 = vrot.lane.b32.xlu0 %v2791_v19, %s2545_s26 }
  0xd6   : > { %961 = vrot.lane.b32.xlu1 %v3021_v63, %s2545_s26  ;;  %1286 = vmatpush1.msra.mxu0 %v1176_v4  ;;  %v1027_v4 = vld [vmem:[%s2702_s11 + $0x48] sm:$0xf] }
  0xd7   : > { %v3031_v5 = vpop.permute.xlu1 %1053  ;;  %v1052_v6 = vpop.permute.xlu0 %1051 }
  0xd8   : > { %v1081_v7 = vsel %vm548_vm0, %v1050_v45, %v1052_v6  ;;  %v1082_v8 = vsel %vm548_vm0, %v1052_v6, %v3031_v5  ;;  %v336_v6 = vld [vmem:[%s2702_s11 + $0x30] sm:$0xff] }
  0xd9   : > { %1113 = vst [vmem:[#allocation2 + $0x138] sm:$0xf] %v1081_v7  ;;  %1114 = vst [vmem:[#allocation2 + $0x208] sm:$0xf] %v1082_v8  ;;  %423 = vrot.lane.b32.xlu0 %v2753_v10, %s2545_s26 }
  0xda   : > { %425 = vrot.lane.b32.xlu1 %v2948_v41, %s2545_s26  ;;  %374 = vst [vmem:[#allocation2 + $0x220] sm:$0xf] %v336_v6 }
  0xdb   : > { %v781_v11 = vpop.permute.xlu1 %780  ;;  %v672_v12 = vpop.permute.xlu0 %671 }
  0xdc   : > { %v814_v13 = vsel %vm548_vm0, %v781_v11, %v783_v1  ;;  %v705_v14 = vsel %vm439_vm1, %v672_v12, %v674_v59  ;;  %v1161_v16 = vld [vmem:[#allocation2 + $0x98] sm:$0xff] }
  0xdd   : > { %846 = vst [vmem:[#allocation2 + $0xf8] sm:$0xf0] %v814_v13  ;;  %737 = vst [vmem:[#allocation2 + $0xf8] sm:$0xf] %v705_v14  ;;  %1287 = vmatprep.subr.mxu0 %v1161_v16  ;;  %693 = vrot.lane.b32.xlu0 %v668_v9, %s2545_s26  ;;  %v3127_v12 = vld [vmem:[#allocation6] sm:$0xff] }
  0xde   : > { %695 = vrot.lane.b32.xlu1 %v2849_v29, %s2545_s26 }
  0xdf   : > { %v3047_v17 = vpop.permute.xlu1 %518  ;;  %v517_v10 = vpop.permute.xlu0 %516 }
  0xe0   : > { %v550_v21 = vsel %vm548_vm0, %v517_v10, %v3047_v17  ;;  %v1195_v22 = vld [vmem:[#allocation2 + $0x208] sm:$0xf]  ;;  %v1194_v23 = vld [vmem:[#allocation2 + $0x138] sm:$0xf] }
  0xe1   : > { %582 = vst [vmem:[#allocation2 + $0x30] sm:$0xf] %v550_v21  ;;  %2218 = vmatprep.subr.msk.mxu1 %vm1212_vm2, %v1195_v22  ;;  %802 = vrot.lane.b32.xlu0 %v2794_v20, %s2544_s2  ;;  %v3067_v20 = vcombine.high %v2997_v51, %v2997_v51 }
  0xe2   : > { %804 = vrot.lane.b32.xlu1 %v2854_v30, %s2544_s2  ;;  %2219 = vmatpush1.msk.msra.mxu1 %vm1212_vm2, %v1194_v23 }
  0xe3   : > { %v3058_v27 = vpop.permute.xlu1 %945  ;;  %v944_v28 = vpop.permute.xlu0 %943 }
  0xe4   : > { %v973_v34 = vsel %vm439_vm1, %v2999_v52, %v944_v28  ;;  %v974_v37 = vsel %vm439_vm1, %v944_v28, %v3058_v27  ;;  %v1160_v39 = vld [vmem:[#allocation2 + $0xf8] sm:$0xff] }
  0xe5   : > { %1005 = vst [vmem:[#allocation2 + $0xa0] sm:$0xf0] %v973_v34  ;;  %1006 = vst [vmem:[#allocation2 + $0x1f8] sm:$0xf0] %v974_v37  ;;  %1288 = vmatpush1.msra.mxu0 %v1160_v39  ;;  %536 = vrot.lane.b32.xlu0 %v2819_v24, %s2544_s2 }
  0xe6   : > { %538 = vrot.lane.b32.xlu1 %v2791_v19, %s2544_s2 }
  0xe7   : > { %v515_v30 = vpop.permute.xlu0 %514  ;;  %v408_v41 = vpop.permute.xlu1 %407 }
  0xe8   : > { %v549_v42 = vsel %vm548_vm0, %v515_v30, %v517_v10  ;;  %v1145_v44 = vld [vmem:[#allocation2 + $0x30] sm:$0xff] }
  0xe9   : > { %581 = vst [vmem:[#allocation2 + $0x80] sm:$0xf] %v549_v42  ;;  %1289 = vmatprep.subr.mxu0 %v1145_v44  ;;  %1071 = vrot.lane.b32.xlu0 %v3067_v20, %s2544_s2  ;;  %v2368_v10 = vld [vmem:[%s2702_s11 + $0x48] ss:$0 sps:$4 sm:$0xff]  }
  0xea   : > { %1073 = vrot.lane.b32.xlu1 %v2868_v31, %s2544_s2 }
  0xeb   : > { %v3078_v45 = vpop.permute.xlu0 %409  ;;  %v678_v24 = vpop.permute.xlu1 %677 }
  0xec   : > { %v441_v46 = vsel %vm439_vm1, %v408_v41, %v3078_v45  ;;  %v707_v47 = vsel %vm439_vm1, %v3009_v58, %v678_v24  ;;  %v1179_v48 = vld [vmem:[#allocation2 + $0x1f8] sm:$0xff]  ;;  %v1178_v49 = vld [vmem:[#allocation2 + $0xa0] sm:$0xff] }
  0xed   : > { %473 = vst [vmem:[#allocation2 + $0x8] sm:$0xf0] %v441_v46  ;;  %739 = vst [vmem:[#allocation2 + $0xe0] sm:$0xf] %v707_v47  ;;  %1356 = vmatprep.subr.mxu1 %v1179_v48  ;;  %427 = vrot.lane.b32.xlu0 %v2770_v15, %s2545_s26  ;;  %v669_v15 = vcombine.high %v2849_v29, %v2849_v29 }
  0xee   : > { %429 = vrot.lane.b32.xlu1 %v2979_v43, %s2545_s26  ;;  %1357 = vmatpush1.msra.mxu1 %v1178_v49 }
  0xef   : > { %v3090_v52 = vpop.permute.xlu0 %679  ;;  %v787_v53 = vpop.permute.xlu1 %786 }
  0xf0   : > { %v708_v54 = vsel %vm439_vm1, %v678_v24, %v3090_v52  ;;  %v816_v55 = vsel %vm548_vm0, %v3023_v0, %v787_v53  ;;  %v1144_v56 = vld [vmem:[#allocation2 + $0x80] sm:$0xff] }
  0xf1   : > { %740 = vst [vmem:[#allocation2 + $0x198] sm:$0xf] %v708_v54  ;;  %848 = vst [vmem:[#allocation2 + $0xe0] sm:$0xf0] %v816_v55  ;;  %1290 = vmatpush1.msra.mxu0 %v1144_v56  ;;  %963 = vrot.lane.b32.xlu0 %v2997_v51, %s2545_s26 }
  0xf2   : > { %965 = vrot.lane.b32.xlu1 %v935_v50, %s2545_s26 }
  0xf3   : > { %v3101_v43 = vpop.permute.xlu0 %788  ;;  %v406_v57 = vpop.permute.xlu1 %405 }
  0xf4   : > { %v817_v58 = vsel %vm548_vm0, %v787_v53, %v3101_v43  ;;  %v440_v59 = vsel %vm439_vm1, %v406_v57, %v408_v41  ;;  %v1129_v60 = vld [vmem:[#allocation2 + $0x8] sm:$0xff]  ;;  %v653_v41 = vld [vmem:[%s2702_s11 + $0x44] sm:$0xf] }
  0xf5   : > { %849 = vst [vmem:[#allocation2 + $0x198] sm:$0xf0] %v817_v58  ;;  %472 = vst [vmem:[#allocation2 + $0xc8] sm:$0xf0] %v440_v59  ;;  %697 = vrot.lane.b32.xlu0 %v669_v15, %s2545_s26  ;;  %1291 = vmatprep.subr.mxu0 %v1129_v60 }
  0xf6   : > { %699 = vrot.lane.b32.xlu1 %v2891_v35, %s2545_s26 }
  0xf7   : > { %v521_v61 = vpop.permute.xlu0 %520  ;;  %v3109_v62 = vpop.permute.xlu1 %522 }
  0xf8   : > { %v551_v0 = vsel %vm548_vm0, %v3047_v17, %v521_v61  ;;  %v552_v1 = vsel %vm548_vm0, %v521_v61, %v3109_v62 }
  0xf9   : > { %583 = vst [vmem:[#allocation2 + $0x10] sm:$0xf] %v551_v0  ;;  %584 = vst [vmem:[#allocation2 + $0x160] sm:$0xf] %v552_v1  ;;  %806 = vrot.lane.b32.xlu0 %v2849_v29, %s2544_s2  ;;  %v352_v29 = vcombine.high %v336_v6, %v336_v6 }
  0xfa   : > { %808 = vrot.lane.b32.xlu1 %v2896_v36, %s2544_s2  ;;  %v1162_v36 = vld [vmem:[#allocation2 + $0xe0] sm:$0xff] }
  0xfb   : > { %v1056_v2 = vpop.permute.xlu0 %1055  ;;  %v3119_v3 = vpop.permute.xlu1 %1057  ;;  %375 = vst [vmem:[#allocation2 + $0xc0] sm:$0xf] %v352_v29 }
  0xfc   : > { %v1083_v7 = vsel %vm548_vm0, %v3031_v5, %v1056_v2  ;;  %v1084_v8 = vsel %vm548_vm0, %v1056_v2, %v3119_v3  ;;  %v1163_v9 = vld [vmem:[#allocation2 + $0x198] sm:$0xff]  ;;  %v1128_v11 = vld [vmem:[#allocation2 + $0xc8] sm:$0xff] }
  0xfd   : > { %1115 = vst [vmem:[#allocation2 + $0x240] sm:$0xf] %v1083_v7  ;;  %1116 = vst [vmem:[#allocation2 + $0x88] sm:$0xf] %v1084_v8  ;;  %1075 = vrot.lane.b32.xlu0 %v2872_v32, %s2544_s2  ;;  %1358 = vmatprep.subr.mxu1 %v1163_v9 }
  0xfe   : > { %1077 = vrot.lane.b32.xlu1 %v1027_v4, %s2544_s2  ;;  %1292 = vmatpush1.msra.mxu0 %v1128_v11 }
  0xff   : > { %1359 = vmatpush1.msra.mxu1 %v1162_v36  ;;  %v412_v5 = vpop.permute.xlu0 %411  ;;  %v3132_v13 = vpop.permute.xlu1 %413  ;;  %2217 = vmatmul.mubr.msk.f32.vlgmr.msra.gmra.mxu0 %vm1208_vm3, %v3127_v12 }
 0x100   : > { %v442_v14 = vsel %vm439_vm1, %v3078_v45, %v412_v5  ;;  %v443_v32 = vsel %vm439_vm1, %v412_v5, %v3132_v13  ;;  %v1147_v16 = vld [vmem:[#allocation2 + $0x160] sm:$0xff]  ;;  %v1146_v17 = vld [vmem:[#allocation2 + $0x10] sm:$0xff]  ;;  %1467 = vmatprep.mubr.f32.mxu0 %v2546_v38 }
 0x101   : > { %474 = vst [vmem:[#allocation2 + $0x40] sm:$0xf0] %v442_v14  ;;  %475 = vst [vmem:[#allocation2 + $0x28] sm:$0xf0] %v443_v32  ;;  %540 = vrot.lane.b32.xlu0 %v2829_v26, %s2544_s2  ;;  %1360 = vmatprep.subr.mxu1 %v1147_v16 }
 0x102   : > { %542 = vrot.lane.b32.xlu1 %v2997_v51, %s2544_s2  ;;  %1361 = vmatpush1.msra.mxu1 %v1146_v17 }
 0x103   : > { %v948_v18 = vpop.permute.xlu0 %947  ;;  %v3146_v21 = vpop.permute.xlu1 %949 }
 0x104   : > { %v975_v22 = vsel %vm439_vm1, %v3058_v27, %v948_v18  ;;  %v976_v23 = vsel %vm439_vm1, %v948_v18, %v3146_v21  ;;  %v1197_v25 = vld [vmem:[#allocation2 + $0x88] sm:$0xf]  ;;  %v1196_v28 = vld [vmem:[#allocation2 + $0x240] sm:$0xf] }
 0x105   : > { %1007 = vst [vmem:[#allocation2 + $0x58] sm:$0xf0] %v975_v22  ;;  %1008 = vst [vmem:[#allocation2 + $0x258] sm:$0xf0] %v976_v23  ;;  %967 = vrot.lane.b32.xlu0 %v2868_v31, %s2545_s26  ;;  %2221 = vmatprep.subr.msk.mxu0 %vm1212_vm2, %v1197_v25  ;;  %v670_v31 = vcombine.high %v2891_v35, %v2891_v35 }
 0x106   : > { %969 = vrot.lane.b32.xlu1 %v2368_v10, %s2545_s26  ;;  %2222 = vmatpush1.msk.msra.mxu0 %vm1212_vm2, %v1196_v28 }
 0x107   : > { %v682_v26 = vpop.permute.xlu0 %681  ;;  %v3157_v33 = vpop.permute.xlu1 %683 }
 0x108   : > { %v709_v27 = vsel %vm439_vm1, %v3090_v52, %v682_v26  ;;  %v710_v34 = vsel %vm439_vm1, %v682_v26, %v3157_v33  ;;  %v1131_v37 = vld [vmem:[#allocation2 + $0x28] sm:$0xff]  ;;  %v1130_v39 = vld [vmem:[#allocation2 + $0x40] sm:$0xff] }
 0x109   : > { %741 = vst [vmem:[#allocation2 + $0x1d0] sm:$0xf] %v709_v27  ;;  %742 = vst [vmem:[#allocation2 + $0x1e0] sm:$0xf] %v710_v34  ;;  %431 = vrot.lane.b32.xlu0 %v2791_v19, %s2545_s26  ;;  %1362 = vmatprep.subr.mxu1 %v1131_v37  ;;  %v496_v52 = vld [vmem:[%s2702_s11 + $0x40] sm:$0xf] }
 0x10a   : > { %433 = vrot.lane.b32.xlu1 %v3021_v63, %s2545_s26  ;;  %1363 = vmatpush1.msra.mxu1 %v1130_v39  ;;  %v2369_v63 = vld [vmem:[%s2702_s11 + $0x44] ss:$0 sps:$4 sm:$0xff]  }
 0x10b   : > { %v791_v40 = vpop.permute.xlu0 %790  ;;  %v3169_v30 = vpop.permute.xlu1 %792  ;;  %2220 = vmatmul.mubr.msk.f32.vlgmr.msra.gmra.mxu1 %vm1208_vm3, %v3127_v12 }
 0x10c   : > { %v818_v42 = vsel %vm548_vm0, %v3101_v43, %v791_v40  ;;  %v819_v44 = vsel %vm548_vm0, %v791_v40, %v3169_v30  ;;  %v1181_v19 = vld [vmem:[#allocation2 + $0x258] sm:$0xff]  ;;  %1538 = vmatprep.mubr.f32.mxu1 %v2546_v38 }
 0x10d   : > { %v1180_v45 = vld [vmem:[#allocation2 + $0x58] sm:$0xff]  ;;  %850 = vst [vmem:[#allocation2 + $0x1d0] sm:$0xf0] %v818_v42  ;;  %851 = vst [vmem:[#allocation2 + $0x1e0] sm:$0xf0] %v819_v44  ;;  %701 = vrot.lane.b32.xlu0 %v670_v31, %s2545_s26  ;;  %1427 = vmatprep.subr.mxu0 %v1181_v19 }
 0x10e   : > { %703 = vrot.lane.b32.xlu1 %v653_v41, %s2545_s26  ;;  %1428 = vmatpush1.msra.mxu0 %v1180_v45 }
 0x10f   : > { %v1060_v24 = vpop.permute.xlu0 %1059  ;;  %v3182_v46 = vpop.permute.xlu1 %1061 }
 0x110   : > { %v1085_v47 = vsel %vm548_vm0, %v3119_v3, %v1060_v24  ;;  %v1086_v48 = vsel %vm548_vm0, %v1060_v24, %v3182_v46 }
 0x111   : > { %1117 = vst [vmem:[#allocation2 + $0x118] sm:$0xf] %v1085_v47  ;;  %1118 = vst [vmem:[#allocation2 + $0x128] sm:$0xf] %v1086_v48  ;;  %810 = vrot.lane.b32.xlu0 %v2891_v35, %s2544_s2  ;;  %v2370_v35 = vld [vmem:[%s2702_s11 + $0x40] ss:$0 sps:$4 sm:$0xff]  }
 0x112   : > { %812 = vrot.lane.b32.xlu1 %v2369_v63, %s2544_s2 }
 0x113   : > { %v525_v49 = vpop.permute.xlu0 %524  ;;  %v527_v50 = vpop.permute.xlu1 %526 }
 0x114   : > { %v553_v53 = vsel %vm548_vm0, %v3109_v62, %v525_v49  ;;  %v554_v54 = vsel %vm548_vm0, %v525_v49, %v527_v50  ;;  %v1165_v55 = vld [vmem:[#allocation2 + $0x1e0] sm:$0xff]  ;;  %v1164_v56 = vld [vmem:[#allocation2 + $0x1d0] sm:$0xff] }
 0x115   : > { %585 = vst [vmem:[#allocation2 + $0x1d8] sm:$0xf] %v553_v53  ;;  %586 = vst [vmem:[#allocation2 + $0x1a0] sm:$0xf] %v554_v54  ;;  %544 = vrot.lane.b32.xlu0 %v3067_v20, %s2544_s2  ;;  %1429 = vmatprep.subr.mxu0 %v1165_v55 }
 0x116   : > { %546 = vrot.lane.b32.xlu1 %v496_v52, %s2544_s2  ;;  %1430 = vmatpush1.msra.mxu0 %v1164_v56 }
 0x117   : > { %v952_v15 = vpop.permute.xlu0 %951  ;;  %v3199_v43 = vpop.permute.xlu1 %953 }
 0x118   : > { %v977_v57 = vsel %vm439_vm1, %v3146_v21, %v952_v15  ;;  %v978_v58 = vsel %vm439_vm1, %v952_v15, %v3199_v43  ;;  %v1199_v59 = vld [vmem:[#allocation2 + $0x128] sm:$0xf]  ;;  %v1198_v60 = vld [vmem:[#allocation2 + $0x118] sm:$0xf] }
 0x119   : > { %1009 = vst [vmem:[#allocation2 + $0x260] sm:$0xf0] %v977_v57  ;;  %1010 = vst [vmem:[#allocation2 + $0x100] sm:$0xf0] %v978_v58  ;;  %435 = vrot.lane.b32.xlu0 %v2997_v51, %s2545_s26  ;;  %2224 = vmatprep.subr.msk.mxu1 %vm1212_vm2, %v1199_v59 }
 0x11a   : > { %437 = vrot.lane.b32.xlu1 %v2370_v35, %s2545_s26  ;;  %2225 = vmatpush1.msk.msra.mxu1 %vm1212_vm2, %v1198_v60 }
 0x11b   : > { %v416_v20 = vpop.permute.xlu0 %415  ;;  %v418_v61 = vpop.permute.xlu1 %417 }
 0x11c   : > { %v444_v62 = vsel %vm439_vm1, %v3132_v13, %v416_v20  ;;  %v445_v0 = vsel %vm439_vm1, %v416_v20, %v418_v61  ;;  %v1149_v1 = vld [vmem:[#allocation2 + $0x1a0] sm:$0xff]  ;;  %v1148_v2 = vld [vmem:[#allocation2 + $0x1d8] sm:$0xff] }
 0x11d   : > { %476 = vst [vmem:[#allocation2 + $0xe8] sm:$0xf0] %v444_v62  ;;  %477 = vst [vmem:[#allocation2 + $0xf0] sm:$0xf0] %v445_v0  ;;  %1431 = vmatprep.subr.mxu0 %v1149_v1 }
 0x11e   : > { %1432 = vmatpush1.msra.mxu0 %v1148_v2 }
 0x11f   : > { %v686_v51 = vpop.permute.xlu0 %685  ;;  %v688_v3 = vpop.permute.xlu1 %687 }
 0x120   : > { %v711_v4 = vsel %vm439_vm1, %v3157_v33, %v686_v51  ;;  %v712_v6 = vsel %vm439_vm1, %v686_v51, %v688_v3  ;;  %v1183_v7 = vld [vmem:[#allocation2 + $0x100] sm:$0xff] }
 0x121   : > { %v1182_v8 = vld [vmem:[#allocation2 + $0x260] sm:$0xff]  ;;  %743 = vst [vmem:[#allocation2 + $0x1a8] sm:$0xf] %v711_v4  ;;  %744 = vst [vmem:[#allocation2 + $0x228] sm:$0xf] %v712_v6  ;;  %1498 = vmatprep.subr.mxu1 %v1183_v7 }
 0x122   : > { %1499 = vmatpush1.msra.mxu1 %v1182_v8 }
 0x123   : > { %v795_v9 = vpop.permute.xlu0 %794  ;;  %v797_v11 = vpop.permute.xlu1 %796 }
 0x124   : > { %v820_v29 = vsel %vm548_vm0, %v3169_v30, %v795_v9  ;;  %v821_v36 = vsel %vm548_vm0, %v795_v9, %v797_v11  ;;  %v1133_v5 = vld [vmem:[#allocation2 + $0xf0] sm:$0xff]  ;;  %v1132_v13 = vld [vmem:[#allocation2 + $0xe8] sm:$0xff] }
 0x125   : > { %852 = vst [vmem:[#allocation2 + $0x1a8] sm:$0xf0] %v820_v29  ;;  %853 = vst [vmem:[#allocation2 + $0x228] sm:$0xf0] %v821_v36  ;;  %1433 = vmatprep.subr.mxu0 %v1133_v5 }
 0x126   : > { %1434 = vmatpush1.msra.mxu0 %v1132_v13 }
 0x127   : > { %v529_v14 = vpop.permute.xlu0 %528  ;;  %v3219_v32 = vpop.permute.xlu1 %530  ;;  %2223 = vmatmul.mubr.msk.f32.vlgmr.msra.gmra.mxu0 %vm1208_vm3, %v3127_v12 }
 0x128   : > { %v555_v16 = vsel %vm548_vm0, %v527_v50, %v529_v14  ;;  %v556_v17 = vsel %vm548_vm0, %v529_v14, %v3219_v32  ;;  %1609 = vmatprep.mubr.f32.mxu0 %v2546_v38 }
 0x129   : > { %587 = vst [vmem:[#allocation2 + $0x248] sm:$0xf] %v555_v16  ;;  %588 = vst [vmem:[#allocation2 + $0x218] sm:$0xf] %v556_v17 }
 0x12b   : > { %v1064_v10 = vpop.permute.xlu0 %1063  ;;  %v1066_v18 = vpop.permute.xlu1 %1065 }
 0x12c   : > { %v1087_v21 = vsel %vm548_vm0, %v3182_v46, %v1064_v10  ;;  %v1088_v22 = vsel %vm548_vm0, %v1064_v10, %v1066_v18  ;;  %v1167_v23 = vld [vmem:[#allocation2 + $0x228] sm:$0xff] }
 0x12d   : > { %v1166_v25 = vld [vmem:[#allocation2 + $0x1a8] sm:$0xff]  ;;  %1119 = vst [vmem:[#allocation2 + $0x1c0] sm:$0xf] %v1087_v21  ;;  %1120 = vst [vmem:[#allocation2 + $0x230] sm:$0xf] %v1088_v22  ;;  %1500 = vmatprep.subr.mxu1 %v1167_v23 }
 0x12e   : > { %1501 = vmatpush1.msra.mxu1 %v1166_v25 }
 0x12f   : > { %v420_v28 = vpop.permute.xlu0 %419  ;;  %v3230_v26 = vpop.permute.xlu1 %421 }
 0x130   : > { %v446_v33 = vsel %vm439_vm1, %v418_v61, %v420_v28  ;;  %v447_v27 = vsel %vm439_vm1, %v420_v28, %v3230_v26  ;;  %v1151_v34 = vld [vmem:[#allocation2 + $0x218] sm:$0xff]  ;;  %v1150_v37 = vld [vmem:[#allocation2 + $0x248] sm:$0xff] }
 0x131   : > { %478 = vst [vmem:[#allocation2 + $0x70] sm:$0xf0] %v446_v33  ;;  %479 = vst [vmem:[#allocation2 + $0x120] sm:$0xf0] %v447_v27  ;;  %1502 = vmatprep.subr.mxu1 %v1151_v34 }
 0x132   : > { %1503 = vmatpush1.msra.mxu1 %v1150_v37 }
 0x133   : > { %v956_v39 = vpop.permute.xlu0 %955  ;;  %v958_v31 = vpop.permute.xlu1 %957 }
 0x134   : > { %v979_v40 = vsel %vm439_vm1, %v3199_v43, %v956_v39  ;;  %v980_v30 = vsel %vm439_vm1, %v956_v39, %v958_v31  ;;  %v1201_v41 = vld [vmem:[#allocation2 + $0x230] sm:$0xf]  ;;  %v1200_v42 = vld [vmem:[#allocation2 + $0x1c0] sm:$0xf] }
 0x135   : > { %1011 = vst [vmem:[#allocation2 + $0x1b8] sm:$0xf0] %v979_v40  ;;  %1012 = vst [vmem:[#allocation2 + $0x168] sm:$0xf0] %v980_v30  ;;  %2227 = vmatprep.subr.msk.mxu0 %vm1212_vm2, %v1201_v41 }
 0x136   : > { %2228 = vmatpush1.msk.msra.mxu0 %vm1212_vm2, %v1200_v42 }
 0x137   : > { %v690_v44 = vpop.permute.xlu0 %689  ;;  %v692_v19 = vpop.permute.xlu1 %691 }
 0x138   : > { %v713_v45 = vsel %vm439_vm1, %v688_v3, %v690_v44  ;;  %v714_v63 = vsel %vm439_vm1, %v690_v44, %v692_v19  ;;  %v1135_v24 = vld [vmem:[#allocation2 + $0x120] sm:$0xff]  ;;  %v1134_v46 = vld [vmem:[#allocation2 + $0x70] sm:$0xff] }
 0x139   : > { %745 = vst [vmem:[#allocation2] sm:$0xf] %v713_v45  ;;  %746 = vst [vmem:[#allocation2 + $0x1b0] sm:$0xf] %v714_v63  ;;  %1504 = vmatprep.subr.mxu1 %v1135_v24 }
 0x13a   : > { %1505 = vmatpush1.msra.mxu1 %v1134_v46 }
 0x13b   : > { %v799_v47 = vpop.permute.xlu0 %798  ;;  %v801_v48 = vpop.permute.xlu1 %800  ;;  %2226 = vmatmul.mubr.msk.f32.vlgmr.msra.gmra.mxu1 %vm1208_vm3, %v3127_v12 }
 0x13c   : > { %v822_v49 = vsel %vm548_vm0, %v797_v11, %v799_v47  ;;  %v823_v50 = vsel %vm548_vm0, %v799_v47, %v801_v48  ;;  %v1185_v52 = vld [vmem:[#allocation2 + $0x168] sm:$0xff]  ;;  %v1184_v53 = vld [vmem:[#allocation2 + $0x1b8] sm:$0xff]  ;;  %1680 = vmatprep.mubr.f32.mxu1 %v2546_v38 }
 0x13d   : > { %854 = vst [vmem:[#allocation2] sm:$0xf0] %v822_v49  ;;  %855 = vst [vmem:[#allocation2 + $0x1b0] sm:$0xf0] %v823_v50  ;;  %1569 = vmatprep.subr.mxu0 %v1185_v52 }
 0x13e   : > { %1570 = vmatpush1.msra.mxu0 %v1184_v53 }
 0x13f   : > { %v1068_v54 = vpop.permute.xlu0 %1067  ;;  %v3247_v55 = vpop.permute.xlu1 %1069 }
 0x140   : > { %v1089_v56 = vsel %vm548_vm0, %v1066_v18, %v1068_v54  ;;  %v1090_v35 = vsel %vm548_vm0, %v1068_v54, %v3247_v55 }
 0x141   : > { %1121 = vst [vmem:[#allocation2 + $0x170] sm:$0xf] %v1089_v56  ;;  %1122 = vst [vmem:[#allocation2 + $0x150] sm:$0xf] %v1090_v35 }
 0x143   : > { %v533_v15 = vpop.permute.xlu0 %532 }
 0x144   : > { %v557_v43 = vsel %vm548_vm0, %v3219_v32, %v533_v15  ;;  %v535_v57 = vpop.permute.xlu1 %534  ;;  %v1169_v58 = vld [vmem:[#allocation2 + $0x1b0] sm:$0xff]  ;;  %v1168_v59 = vld [vmem:[#allocation2] sm:$0xff] }
 0x145   : > { %589 = vst [vmem:[#allocation2 + $0x190] sm:$0xf] %v557_v43  ;;  %v558_v60 = vsel %vm548_vm0, %v533_v15, %v535_v57  ;;  %1571 = vmatprep.subr.mxu0 %v1169_v58 }
 0x146   : > { %590 = vst [vmem:[#allocation2 + $0x48] sm:$0xf] %v558_v60  ;;  %1572 = vmatpush1.msra.mxu0 %v1168_v59 }
 0x147   : > { %v960_v20 = vpop.permute.xlu0 %959 }
 0x148   : > { %v981_v61 = vsel %vm439_vm1, %v958_v31, %v960_v20  ;;  %v3256_v62 = vpop.permute.xlu1 %961  ;;  %v1203_v0 = vld [vmem:[#allocation2 + $0x150] sm:$0xf] }
 0x149   : > { %v1202_v1 = vld [vmem:[#allocation2 + $0x170] sm:$0xf]  ;;  %1013 = vst [vmem:[#allocation2 + $0xd0] sm:$0xf0] %v981_v61  ;;  %v982_v2 = vsel %vm439_vm1, %v960_v20, %v3256_v62  ;;  %2230 = vmatprep.subr.msk.mxu1 %vm1212_vm2, %v1203_v0 }
 0x14a   : > { %1014 = vst [vmem:[#allocation2 + $0x278] sm:$0xf0] %v982_v2  ;;  %2231 = vmatpush1.msk.msra.mxu1 %vm1212_vm2, %v1202_v1 }
 0x14b   : > { %v424_v51 = vpop.permute.xlu0 %423 }
 0x14c   : > { %v448_v3 = vsel %vm439_vm1, %v3230_v26, %v424_v51  ;;  %v426_v4 = vpop.permute.xlu1 %425  ;;  %v1152_v6 = vld [vmem:[#allocation2 + $0x190] sm:$0xff] }
 0x14d   : > { %480 = vst [vmem:[#allocation2 + $0xd8] sm:$0xf0] %v448_v3  ;;  %v449_v7 = vsel %vm439_vm1, %v424_v51, %v426_v4  ;;  %v1153_v8 = vld [vmem:[#allocation2 + $0x48] sm:$0xff] }
 0x14e   : > { %481 = vst [vmem:[#allocation2 + $0x148] sm:$0xf0] %v449_v7  ;;  %1573 = vmatprep.subr.mxu0 %v1153_v8 }
 0x14f   : > { %1574 = vmatpush1.msra.mxu0 %v1152_v6  ;;  %v694_v9 = vpop.permute.xlu0 %693 }
 0x150   : > { %v715_v11 = vsel %vm439_vm1, %v692_v19, %v694_v9  ;;  %v696_v29 = vpop.permute.xlu1 %695  ;;  %v1186_v36 = vld [vmem:[#allocation2 + $0xd0] sm:$0xff] }
 0x151   : > { %747 = vst [vmem:[#allocation2 + $0x90] sm:$0xf] %v715_v11  ;;  %v716_v5 = vsel %vm439_vm1, %v694_v9, %v696_v29  ;;  %v1187_v13 = vld [vmem:[#allocation2 + $0x278] sm:$0xff] }
 0x152   : > { %748 = vst [vmem:[#allocation2 + $0x270] sm:$0xf] %v716_v5  ;;  %1640 = vmatprep.subr.mxu1 %v1187_v13 }
 0x153   : > { %1641 = vmatpush1.msra.mxu1 %v1186_v36  ;;  %v803_v14 = vpop.permute.xlu0 %802 }
 0x154   : > { %v824_v32 = vsel %vm548_vm0, %v801_v48, %v803_v14  ;;  %v805_v16 = vpop.permute.xlu1 %804  ;;  %v1136_v17 = vld [vmem:[#allocation2 + $0xd8] sm:$0xff] }
 0x155   : > { %856 = vst [vmem:[#allocation2 + $0x90] sm:$0xf0] %v824_v32  ;;  %v825_v10 = vsel %vm548_vm0, %v803_v14, %v805_v16  ;;  %v1137_v18 = vld [vmem:[#allocation2 + $0x148] sm:$0xff] }
 0x156   : > { %857 = vst [vmem:[#allocation2 + $0x270] sm:$0xf0] %v825_v10  ;;  %1575 = vmatprep.subr.mxu0 %v1137_v18 }
 0x157   : > { %1576 = vmatpush1.msra.mxu0 %v1136_v17  ;;  %v537_v21 = vpop.permute.xlu0 %536 }
 0x158   : > { %v559_v22 = vsel %vm548_vm0, %v535_v57, %v537_v21  ;;  %v3270_v23 = vpop.permute.xlu1 %538  ;;  %2229 = vmatmul.mubr.msk.f32.vlgmr.msra.gmra.mxu0 %vm1208_vm3, %v3127_v12 }
 0x159   : > { %591 = vst [vmem:[#allocation2 + $0x68] sm:$0xf] %v559_v22  ;;  %v560_v25 = vsel %vm548_vm0, %v537_v21, %v3270_v23  ;;  %1751 = vmatprep.mubr.f32.mxu0 %v2546_v38 }
 0x15a   : > { %592 = vst [vmem:[#allocation2 + $0x238] sm:$0xf] %v560_v25 }
 0x15b   : > { %v1072_v28 = vpop.permute.xlu0 %1071 }
 0x15c   : > { %v1091_v26 = vsel %vm548_vm0, %v3247_v55, %v1072_v28  ;;  %v1074_v33 = vpop.permute.xlu1 %1073  ;;  %v1170_v27 = vld [vmem:[#allocation2 + $0x90] sm:$0xff] }
 0x15d   : > { %1123 = vst [vmem:[#allocation2 + $0x20] sm:$0xf] %v1091_v26  ;;  %v1092_v34 = vsel %vm548_vm0, %v1072_v28, %v1074_v33  ;;  %v1171_v37 = vld [vmem:[#allocation2 + $0x270] sm:$0xff] }
 0x15e   : > { %1124 = vst [vmem:[#allocation2 + $0x178] sm:$0xf] %v1092_v34  ;;  %1642 = vmatprep.subr.mxu1 %v1171_v37 }
 0x15f   : > { %1643 = vmatpush1.msra.mxu1 %v1170_v27  ;;  %v428_v39 = vpop.permute.xlu0 %427 }
 0x160   : > { %v450_v31 = vsel %vm439_vm1, %v426_v4, %v428_v39  ;;  %v3281_v40 = vpop.permute.xlu1 %429  ;;  %v1154_v30 = vld [vmem:[#allocation2 + $0x68] sm:$0xff] }
 0x161   : > { %482 = vst [vmem:[#allocation2 + $0x158] sm:$0xf0] %v450_v31  ;;  %v451_v41 = vsel %vm439_vm1, %v428_v39, %v3281_v40  ;;  %v1155_v42 = vld [vmem:[#allocation2 + $0x238] sm:$0xff] }
 0x162   : > { %483 = vst [vmem:[#allocation2 + $0x108] sm:$0xf0] %v451_v41  ;;  %1644 = vmatprep.subr.mxu1 %v1155_v42 }
 0x163   : > { %1645 = vmatpush1.msra.mxu1 %v1154_v30  ;;  %v964_v44 = vpop.permute.xlu0 %963 }
 0x164   : > { %v983_v19 = vsel %vm439_vm1, %v3256_v62, %v964_v44  ;;  %v966_v45 = vpop.permute.xlu1 %965  ;;  %v1204_v63 = vld [vmem:[#allocation2 + $0x20] sm:$0xf] }
 0x165   : > { %1015 = vst [vmem:[#allocation2 + $0x210] sm:$0xf0] %v983_v19  ;;  %v984_v24 = vsel %vm439_vm1, %v964_v44, %v966_v45  ;;  %v1205_v46 = vld [vmem:[#allocation2 + $0x178] sm:$0xf] }
 0x166   : > { %1016 = vst [vmem:[#allocation2 + $0x180] sm:$0xf0] %v984_v24  ;;  %2233 = vmatprep.subr.msk.mxu0 %vm1212_vm2, %v1205_v46 }
 0x167   : > { %2234 = vmatpush1.msk.msra.mxu0 %vm1212_vm2, %v1204_v63  ;;  %v698_v47 = vpop.permute.xlu0 %697  ;;  %v1849_v63 = vlaneseq }
 0x168   : > { %v717_v48 = vsel %vm439_vm1, %v696_v29, %v698_v47  ;;  %v700_v49 = vpop.permute.xlu1 %699  ;;  %v1138_v50 = vld [vmem:[#allocation2 + $0x158] sm:$0xff] }
 0x169   : > { %749 = vst [vmem:[#allocation2 + $0x1e8] sm:$0xf] %v717_v48  ;;  %v718_v52 = vsel %vm439_vm1, %v698_v47, %v700_v49  ;;  %v1139_v53 = vld [vmem:[#allocation2 + $0x108] sm:$0xff]  ;;  %v3321_v24 = vshrl.u32 %v1849_v63, 7  ;;  %v1845_v47 = vld [vmem:[#allocation8] sm:$0xff] }
 0x16a   : > { %750 = vst [vmem:[#allocation2 + $0x38] sm:$0xf] %v718_v52  ;;  %1646 = vmatprep.subr.mxu1 %v1139_v53 }
 0x16b   : > { %1647 = vmatpush1.msra.mxu1 %v1138_v50  ;;  %v807_v54 = vpop.permute.xlu0 %806  ;;  %v1851_v46 = vsub.s32 0, %v3321_v24  ;;  %v1855_v48 = vsub.s32 1, %v3321_v24 }
 0x16c   : > { %v826_v55 = vsel %vm548_vm0, %v805_v16, %v807_v54  ;;  %v809_v56 = vpop.permute.xlu1 %808  ;;  %v1188_v35 = vld [vmem:[#allocation2 + $0x210] sm:$0xff]  ;;  %2232 = vmatmul.mubr.msk.f32.vlgmr.msra.gmra.mxu1 %vm1208_vm3, %v3127_v12 }
 0x16d   : > { %858 = vst [vmem:[#allocation2 + $0x1e8] sm:$0xf0] %v826_v55  ;;  %v827_v15 = vsel %vm548_vm0, %v807_v54, %v809_v56  ;;  %v1189_v43 = vld [vmem:[#allocation2 + $0x180] sm:$0xff]  ;;  %1822 = vmatprep.mubr.f32.mxu1 %v2546_v38  ;;  %v1856_v50 = vrot.slane %v1845_v47, %v1855_v48 }
 0x16e   : > { %859 = vst [vmem:[#allocation2 + $0x38] sm:$0xf0] %v827_v15  ;;  %1711 = vmatprep.subr.mxu0 %v1189_v43  ;;  %v1859_v15 = vsub.s32 2, %v3321_v24 }
 0x16f   : > { %1712 = vmatpush1.msra.mxu0 %v1188_v35  ;;  %v1076_v57 = vpop.permute.xlu0 %1075 }
 0x170   : > { %v1093_v58 = vsel %vm548_vm0, %v1074_v33, %v1076_v57  ;;  %v1078_v59 = vpop.permute.xlu1 %1077 }
 0x171   : > { %1125 = vst [vmem:[#allocation2 + $0x50] sm:$0xf] %v1093_v58  ;;  %v1094_v60 = vsel %vm548_vm0, %v1076_v57, %v1078_v59  ;;  %v1863_v57 = vsub.s32 3, %v3321_v24  ;;  %v1860_v58 = vrot.slane %v1845_v47, %v1859_v15 }
 0x172   : > { %1126 = vst [vmem:[#allocation2 + $0xb0] sm:$0xf] %v1094_v60 }
 0x173   : > { %v541_v20 = vpop.permute.xlu0 %540  ;;  %v1864_v59 = vrot.slane %v1845_v47, %v1863_v57 }
 0x174   : > { %v561_v61 = vsel %vm548_vm0, %v3270_v23, %v541_v20  ;;  %v543_v62 = vpop.permute.xlu1 %542  ;;  %v1172_v0 = vld [vmem:[#allocation2 + $0x1e8] sm:$0xff] }
 0x175   : > { %593 = vst [vmem:[#allocation2 + $0x188] sm:$0xf] %v561_v61  ;;  %v562_v38 = vsel %vm548_vm0, %v541_v20, %v543_v62  ;;  %v1173_v1 = vld [vmem:[#allocation2 + $0x38] sm:$0xff] }
 0x176   : > { %594 = vst [vmem:[#allocation2 + $0x250] sm:$0xf] %v562_v38  ;;  %1713 = vmatprep.subr.mxu0 %v1173_v1 }
 0x177   : > { %1714 = vmatpush1.msra.mxu0 %v1172_v0  ;;  %v968_v2 = vpop.permute.xlu0 %967 }
 0x178   : > { %v985_v51 = vsel %vm439_vm1, %v966_v45, %v968_v2  ;;  %v970_v3 = vpop.permute.xlu1 %969  ;;  %v1206_v4 = vld [vmem:[#allocation2 + $0x50] sm:$0xf] }
 0x179   : > { %1017 = vst [vmem:[#allocation2 + $0x130] sm:$0xf0] %v985_v51  ;;  %v986_v6 = vsel %vm439_vm1, %v968_v2, %v970_v3  ;;  %v1207_v7 = vld [vmem:[#allocation2 + $0xb0] sm:$0xf] }
 0x17a   : > { %1018 = vst [vmem:[#allocation2 + $0x110] sm:$0xf0] %v986_v6  ;;  %2236 = vmatprep.subr.msk.mxu1 %vm1212_vm2, %v1207_v7  ;;  %v1871_v6 = vsub.s32 5, %v3321_v24 }
 0x17b   : > { %2237 = vmatpush1.msk.msra.mxu1 %vm1212_vm2, %v1206_v4  ;;  %v432_v8 = vpop.permute.xlu0 %431  ;;  %v1867_v4 = vsub.s32 4, %v3321_v24 }
 0x17c   : > { %v452_v9 = vsel %vm439_vm1, %v3281_v40, %v432_v8  ;;  %v434_v11 = vpop.permute.xlu1 %433  ;;  %v1156_v29 = vld [vmem:[#allocation2 + $0x188] sm:$0xff] }
 0x17d   : > { %484 = vst [vmem:[#allocation2 + $0x220] sm:$0xf0] %v452_v9  ;;  %v453_v36 = vsel %vm439_vm1, %v432_v8, %v434_v11  ;;  %v1157_v5 = vld [vmem:[#allocation2 + $0x250] sm:$0xff]  ;;  %v1868_v7 = vrot.slane %v1845_v47, %v1867_v4  ;;  %v1872_v8 = vrot.slane %v1845_v47, %v1871_v6 }
 0x17e   : > { %485 = vst [vmem:[#allocation2 + $0xc0] sm:$0xf0] %v453_v36  ;;  %1715 = vmatprep.subr.mxu0 %v1157_v5 }
 0x17f   : > { %1716 = vmatpush1.msra.mxu0 %v1156_v29  ;;  %v702_v13 = vpop.permute.xlu0 %701 }
 0x180   : > { %v719_v14 = vsel %vm439_vm1, %v700_v49, %v702_v13  ;;  %v704_v32 = vpop.permute.xlu1 %703  ;;  %v1190_v16 = vld [vmem:[#allocation2 + $0x130] sm:$0xff]  ;;  %v1852_v49 = vrot.slane %v1845_v47, %v1851_v46 }
 0x181   : > { %751 = vst [vmem:[#allocation2 + $0x1c8] sm:$0xf] %v719_v14  ;;  %v720_v17 = vsel %vm439_vm1, %v702_v13, %v704_v32  ;;  %v1191_v10 = vld [vmem:[#allocation2 + $0x110] sm:$0xff] }
 0x182   : > { %752 = vst [vmem:[#allocation2 + $0x18] sm:$0xf] %v720_v17  ;;  %1782 = vmatprep.subr.mxu1 %v1191_v10  ;;  %v1875_v10 = vsub.s32 6, %v3321_v24 }
 0x183   : > { %1783 = vmatpush1.msra.mxu1 %v1190_v16  ;;  %v811_v18 = vpop.permute.xlu0 %810 }
 0x184   : > { %v828_v21 = vsel %vm548_vm0, %v809_v56, %v811_v18  ;;  %v813_v22 = vpop.permute.xlu1 %812  ;;  %v1140_v23 = vld [vmem:[#allocation2 + $0x220] sm:$0xff] }
 0x185   : > { %860 = vst [vmem:[#allocation2 + $0x1c8] sm:$0xf0] %v828_v21  ;;  %v829_v25 = vsel %vm548_vm0, %v811_v18, %v813_v22  ;;  %v1141_v28 = vld [vmem:[#allocation2 + $0xc0] sm:$0xff]  ;;  %v1879_v18 = vsub.s32 7, %v3321_v24  ;;  %v1876_v21 = vrot.slane %v1845_v47, %v1875_v10 }
 0x186   : > { %861 = vst [vmem:[#allocation2 + $0x18] sm:$0xf0] %v829_v25  ;;  %1717 = vmatprep.subr.mxu0 %v1141_v28 }
 0x187   : > { %1718 = vmatpush1.msra.mxu0 %v1140_v23  ;;  %v545_v26 = vpop.permute.xlu0 %544  ;;  %v1880_v22 = vrot.slane %v1845_v47, %v1879_v18 }
 0x188   : > { %v563_v33 = vsel %vm548_vm0, %v543_v62, %v545_v26  ;;  %v547_v27 = vpop.permute.xlu1 %546  ;;  %2235 = vmatmul.mubr.msk.f32.vlgmr.msra.gmra.mxu0 %vm1208_vm3, %v3127_v12 }
 0x189   : > { %595 = vst [vmem:[#allocation2 + $0xb8] sm:$0xf] %v563_v33  ;;  %v564_v34 = vsel %vm548_vm0, %v545_v26, %v547_v27 }
 0x18a   : > { %596 = vst [vmem:[#allocation2 + $0x268] sm:$0xf] %v564_v34 }
 0x18b   : > { %v436_v37 = vpop.permute.xlu0 %435 }
 0x18c   : > { %v454_v39 = vsel %vm439_vm1, %v434_v11, %v436_v37  ;;  %v438_v31 = vpop.permute.xlu1 %437  ;;  %v1174_v40 = vld [vmem:[#allocation2 + $0x1c8] sm:$0xff] }
 0x18d   : > { %486 = vst [vmem:[#allocation2 + $0x140] sm:$0xf0] %v454_v39  ;;  %v455_v30 = vsel %vm439_vm1, %v436_v37, %v438_v31  ;;  %v1175_v41 = vld [vmem:[#allocation2 + $0x18] sm:$0xff] }
 0x18e   : > { %487 = vst [vmem:[#allocation2 + $0x200] sm:$0xf0] %v455_v30  ;;  %1784 = vmatprep.subr.mxu1 %v1175_v41 }
 0x18f   : > { %1785 = vmatpush1.msra.mxu1 %v1174_v40 }
 0x190   : > { %v1158_v42 = vld [vmem:[#allocation2 + $0xb8] sm:$0xff] }
 0x191   : > { %v1159_v44 = vld [vmem:[#allocation2 + $0x268] sm:$0xff] }
 0x192   : > { %1786 = vmatprep.subr.mxu1 %v1159_v44  ;;  %v1846_v44 = vld [vmem:[#allocation8 + $0x8] sm:$0xff] }
 0x193   : > { %1787 = vmatpush1.msra.mxu1 %v1158_v42  ;;  %v1888_v63 = vrot.slane %v1846_v44, %v1855_v48 }
 0x194   : > { %v1142_v19 = vld [vmem:[#allocation2 + $0x140] sm:$0xff] }
 0x195   : > { %v1143_v45 = vld [vmem:[#allocation2 + $0x200] sm:$0xff] }
 0x196   : > { %1788 = vmatprep.subr.mxu1 %v1143_v45 }
 0x197   : > { %1789 = vmatpush1.msra.mxu1 %v1142_v19  ;;  %v1884_v19 = vrot.slane %v1846_v44, %v1851_v46 }
 0x198   : > { %2238 = vmatmul.mubr.msk.f32.vlgmr.msra.gmra.mxu1 %vm1208_vm3, %v3127_v12 }
 0x1bf   : > { %v1327_v52 = vpop.f32.mrf.mxu0 }
 0x1c0   : > { %1829 = vst [vmem:[%s3330_s30] sm:$0xff] %v1327_v52  ;;  %v1929_v12 = vmul.f32 %v1852_v49, %v1327_v52 }
 0x1c1   : > { %v1329_v53 = vpop.f32.mrf.mxu0 }
 0x1c2   : > { %v1964_v54 = vmul.f32 %v1929_v12, %v1327_v52  ;;  %1830 = vst [vmem:[%s3330_s30 + $0x8] sm:$0xff] %v1329_v53  ;;  %v1930_v55 = vmul.f32 %v1856_v50, %v1329_v53  ;;  %v1892_v50 = vrot.slane %v1846_v44, %v1859_v15 }
 0x1c4   : > { %v1945_v56 = vadd.f32 %v1930_v55, %v1929_v12  ;;  %v1965_v35 = vmul.f32 %v1930_v55, %v1329_v53  ;;  %v1896_v55 = vrot.slane %v1846_v44, %v1863_v57 }
 0x1c6   : > { %v1980_v43 = vadd.f32 %v1965_v35, %v1964_v54 }
 0x1cb   : > { %v1398_v60 = vpop.f32.mrf.mxu1 }
 0x1cc   : > { %1831 = vst [vmem:[%s3330_s30 + $0x10] sm:$0xff] %v1398_v60  ;;  %v1931_v20 = vmul.f32 %v1860_v58, %v1398_v60 }
 0x1cd   : > { %v1400_v61 = vpop.f32.mrf.mxu1 }
 0x1ce   : > { %v1946_v62 = vadd.f32 %v1945_v56, %v1931_v20  ;;  %v1966_v0 = vmul.f32 %v1931_v20, %v1398_v60  ;;  %1832 = vst [vmem:[%s3330_s30 + $0x18] sm:$0xff] %v1400_v61  ;;  %v1932_v38 = vmul.f32 %v1864_v59, %v1400_v61  ;;  %v1900_v59 = vrot.slane %v1846_v44, %v1867_v4 }
 0x1d0   : > { %v1981_v1 = vadd.f32 %v1980_v43, %v1966_v0  ;;  %v1947_v2 = vadd.f32 %v1946_v62, %v1932_v38  ;;  %v1967_v51 = vmul.f32 %v1932_v38, %v1400_v61  ;;  %v1904_v62 = vrot.slane %v1846_v44, %v1871_v6 }
 0x1d2   : > { %v1982_v3 = vadd.f32 %v1981_v1, %v1967_v51  ;;  %v1908_v51 = vrot.slane %v1846_v44, %v1875_v10 }
 0x1e7   : > { %v1469_v9 = vpop.f32.mrf.mxu0 }
 0x1e8   : > { %1833 = vst [vmem:[%s3330_s30 + $0x20] sm:$0xff] %v1469_v9  ;;  %v1933_v11 = vmul.f32 %v1868_v7, %v1469_v9 }
 0x1e9   : > { %v1471_v29 = vpop.f32.mrf.mxu0 }
 0x1ea   : > { %v1948_v36 = vadd.f32 %v1947_v2, %v1933_v11  ;;  %v1968_v5 = vmul.f32 %v1933_v11, %v1469_v9  ;;  %1834 = vst [vmem:[%s3330_s30 + $0x28] sm:$0xff] %v1471_v29  ;;  %v1934_v13 = vmul.f32 %v1872_v8, %v1471_v29  ;;  %v1912_v8 = vrot.slane %v1846_v44, %v1879_v18 }
 0x1ec   : > { %v1983_v14 = vadd.f32 %v1982_v3, %v1968_v5  ;;  %v1949_v32 = vadd.f32 %v1948_v36, %v1934_v13  ;;  %v1969_v16 = vmul.f32 %v1934_v13, %v1471_v29 }
 0x1ee   : > { %v1984_v17 = vadd.f32 %v1983_v14, %v1969_v16 }
 0x1fb   : > { %v1540_v23 = vpop.f32.mrf.mxu1 }
 0x1fc   : > { %1835 = vst [vmem:[%s3330_s30 + $0x30] sm:$0xff] %v1540_v23  ;;  %v1935_v25 = vmul.f32 %v1876_v21, %v1540_v23 }
 0x1fd   : > { %v1542_v28 = vpop.f32.mrf.mxu1 }
 0x1fe   : > { %v1950_v26 = vadd.f32 %v1949_v32, %v1935_v25  ;;  %v1970_v33 = vmul.f32 %v1935_v25, %v1540_v23  ;;  %1836 = vst [vmem:[%s3330_s30 + $0x38] sm:$0xff] %v1542_v28  ;;  %v1936_v27 = vmul.f32 %v1880_v22, %v1542_v28 }
 0x200   : > { %v1985_v34 = vadd.f32 %v1984_v17, %v1970_v33  ;;  %v1951_v37 = vadd.f32 %v1950_v26, %v1936_v27  ;;  %v1971_v39 = vmul.f32 %v1936_v27, %v1542_v28 }
 0x202   : > { %v1986_v31 = vadd.f32 %v1985_v34, %v1971_v39 }
 0x218   : > { %v1611_v40 = vpop.f32.mrf.mxu0 }
 0x219   : > { %1837 = vst [vmem:[%s3330_s30 + $0x40] sm:$0xff] %v1611_v40  ;;  %v1937_v45 = vmul.f32 %v1884_v19, %v1611_v40 }
 0x21a   : > { %v1613_v30 = vpop.f32.mrf.mxu0 }
 0x21b   : > { %1838 = vst [vmem:[%s3330_s30 + $0x48] sm:$0xff] %v1613_v30  ;;  %v1972_v47 = vmul.f32 %v1937_v45, %v1611_v40  ;;  %v1938_v49 = vmul.f32 %v1888_v63, %v1613_v30  ;;  %v1952_v52 = vadd.f32 %v1951_v37, %v1937_v45 }
 0x21d   : > { %v1987_v12 = vadd.f32 %v1986_v31, %v1972_v47  ;;  %v1973_v53 = vmul.f32 %v1938_v49, %v1613_v30  ;;  %v1953_v35 = vadd.f32 %v1952_v52, %v1938_v49 }
 0x21f   : > { %v1988_v43 = vadd.f32 %v1987_v12, %v1973_v53 }
 0x22c   : > { %v1682_v41 = vpop.f32.mrf.mxu1 }
 0x22d   : > { %1839 = vst [vmem:[%s3330_s30 + $0x50] sm:$0xff] %v1682_v41  ;;  %v1939_v54 = vmul.f32 %v1892_v50, %v1682_v41 }
 0x22e   : > { %v1684_v42 = vpop.f32.mrf.mxu1 }
 0x22f   : > { %1840 = vst [vmem:[%s3330_s30 + $0x58] sm:$0xff] %v1684_v42  ;;  %v1974_v58 = vmul.f32 %v1939_v54, %v1682_v41  ;;  %v1940_v48 = vmul.f32 %v1896_v55, %v1684_v42  ;;  %v1954_v60 = vadd.f32 %v1953_v35, %v1939_v54 }
 0x231   : > { %v1989_v20 = vadd.f32 %v1988_v43, %v1974_v58  ;;  %v1975_v15 = vmul.f32 %v1940_v48, %v1684_v42  ;;  %v1955_v0 = vadd.f32 %v1954_v60, %v1940_v48 }
 0x233   : > { %v1990_v38 = vadd.f32 %v1989_v20, %v1975_v15 }
 0x248   : > { %v1753_v56 = vpop.f32.mrf.mxu0 }
 0x249   : > { %1841 = vst [vmem:[%s3330_s30 + $0x60] sm:$0xff] %v1753_v56  ;;  %v1941_v61 = vmul.f32 %v1900_v59, %v1753_v56 }
 0x24a   : > { %v1755_v46 = vpop.f32.mrf.mxu0 }
 0x24b   : > { %1842 = vst [vmem:[%s3330_s30 + $0x68] sm:$0xff] %v1755_v46  ;;  %v1976_v57 = vmul.f32 %v1941_v61, %v1753_v56  ;;  %v1942_v1 = vmul.f32 %v1904_v62, %v1755_v46  ;;  %v1956_v2 = vadd.f32 %v1955_v0, %v1941_v61 }
 0x24d   : > { %v1991_v3 = vadd.f32 %v1990_v38, %v1976_v57  ;;  %v1977_v7 = vmul.f32 %v1942_v1, %v1755_v46  ;;  %v1957_v9 = vadd.f32 %v1956_v2, %v1942_v1 }
 0x24f   : > { %v1992_v24 = vadd.f32 %v1991_v3, %v1977_v7 }
 0x258   : > { %v1824_v4 = vpop.f32.mrf.mxu1 }
 0x259   : > { %1843 = vst [vmem:[%s3330_s30 + $0x70] sm:$0xff] %v1824_v4  ;;  %v1943_v11 = vmul.f32 %v1908_v51, %v1824_v4 }
 0x25a   : > { %v1826_v29 = vpop.f32.mrf.mxu1 }
 0x25b   : > { %v1958_v6 = vadd.f32 %v1957_v9, %v1943_v11  ;;  %v1978_v36 = vmul.f32 %v1943_v11, %v1824_v4  ;;  %1844 = vst [vmem:[%s3330_s30 + $0x78] sm:$0xff] %v1826_v29  ;;  %v1944_v5 = vmul.f32 %v1912_v8, %v1826_v29 }
 0x25d   : > { %v1993_v13 = vadd.f32 %v1992_v24, %v1978_v36  ;;  %v1959_v14 = vadd.f32 %v1958_v6, %v1944_v5  ;;  %v1979_v32 = vmul.f32 %v1944_v5, %v1826_v29 }
 0x25f   : > { %v1994_v16 = vadd.f32 %v1993_v13, %v1979_v32  ;;  %1960 = vadd.xlane.f32.xlu0 %v1959_v14 }
 0x261   : > { %1995 = vadd.xlane.f32.xlu1 %v1994_v16 }
 0x262   : > { %2468 = shalt.err (!%p2465_p0)
}
 0x263   : > { %s2469_s8 = scalar_lea.hbm %s2027_s14, 2048  ;;  %s2473_s2 = scalar_lea.hbm %s3422_s3, 4096 }
 0x264   : > { %p2470_p1 = scmp.ne.s32.totalorder %s2027_s14, %s2469_s8  ;;  %p2474_p6 = scmp.lt.s32.totalorder %s2027_s14, %s3422_s3 }
 0x265   : > { %p2475_p8 = scmp.lt.s32.totalorder %s2473_s2, %s2469_s8 }
 0x266   : > { %p2471_p2 = pnand %p2470_p1, %p2673_p12 }
 0x267   : > { %p2476_p9 = por %p2475_p8, %p2474_p6 }
 0x268   : > { %p2472_p4 = pneg %p2471_p2 }
 0x26a   : > { %p2477_p3 = pnand %p2476_p9, %p2472_p4 }
 0x26c   : > { %2480 = shalt.err (!%p2477_p3)
}
 0x26d   : > { %2258 = dma.vmem_to_hbm [thread:$0]  (%p2673_p12), %s2030_s27, 2048, %s2027_s14, %s1999_s15   ;;  %vm1962_vm4 = vcmask 7168  }
 0x26e   : > { %p316_p11 = scmp.lt.s32.totalorder %s2531_s21, 1 }
 0x270   : > { %s3455_s21 = smov (!%p316_p11, %s2531_s21), 1 }
 0x271   : > { %s2213_s30 = sshll.u32 %s3455_s21, 3 }
 0x272   : > { %s322_s13 = scalar_lea.vmem %s3423_s4, %s2213_s30  ;;  %s329_s24 = scalar_lea.vmem %s3424_s5, %s2213_s30 }
 0x2e8   : > { %v1961_v17 = vpop.xlane.xlu0 %1960 }
 0x2e9   : > { %1963 = vst.msk [vmem:[%s322_s13] sm:$0xff] %vm1962_vm4, %v1961_v17 }
 0x2ea   : > { %v1996_v10 = vpop.xlane.xlu1 %1995 }
 0x2eb   : > { %1997 = vst.msk [vmem:[%s329_s24] sm:$0xff] %vm1962_vm4, %v1996_v10 }
 0x2ec PF: > { %s2047_s25 = sand.u32 1, %s2519_s18   ;;  %p3445_p12 = scmp.ne.s32.totalorder %s3434_s29, 0 }
 0x2ed   : > { %p3446_p5 = scmp.ge.s32.totalorder %s2539_s23, 2  ;;  %s2048_s21 = scalar_lea.sflag [#allocation5], %s2047_s25 }
 0x2ef   : > { %p2272_p7 = pnand %p3446_p5, %p3445_p12 }
 0x2f1   : > { %p2273_p10 = pneg %p2272_p7 }
 0x2f3   : > { %2514 = dma.done.wait (%p2273_p10), %s2048_s21, 2048  }
 0x2f4   : > { %2516 = vsyncadd (%p2273_p10), %s2048_s21, 4294965248  ;;  %s23_s23 = sadd.s32 1, %s2539_s23   ;;  %s3447_s18 = smov %s2523_s19 }
 0x2f5   : > { %p20_p13 = scmp.ge.s32.totalorder %s23_s23, 4   ;;  %s3448_s19 = smov %s2527_s20 }
 0x2f6   : > { %s3449_s20 = smov %s2685_s10  ;;  %s3450_s21 = smov %s2535_s22 }
 0x2f7   : > { %s3451_s22 = smov %s3453_s17  ;;  %22 = sbr.rel (!%p20_p13) target bundleno = 10 (0xa), region = 110 }
 0x2fc   :  { %2073 = vsyncpa [#allocation4], 1 }
 0x2fd   :  { %2075 = vsyncpa [#allocation4 + $0x1], 1 }
 0x2fe   :  { %2076 = vsyncpa [#allocation7], 1 }
 0x2ff   :  { %2077 = vsyncpa [#allocation5], 1 }
 0x300   :  { %2079 = vsyncpa [#allocation5 + $0x1], 1 }

</bundles_post_ra>
